<compile_context>
chip_gen: v7x
topology: tpu7x:2x2x1
jax: 0.10.0
libtpu: 0.0.40
codegen_flags: <defaults>
</compile_context>

<pallas_src>
import functools

import jax
import jax.numpy as jnp
from jax.experimental import pallas as pl
from jax.experimental.pallas import tpu as pltpu

BN_EPS = 1e-5
LANE = 128


def _round_up(x, m):
    return (x + m - 1) // m * m


# ----------------------------------------------------------------------------
# Fused bottleneck kernel: conv1(1x1)+BN+ReLU -> conv2(3x3)+BN+ReLU ->
# conv3(1x1)+BN (+ shortcut conv1x1+BN) + residual add + ReLU, all in VMEM.
# ----------------------------------------------------------------------------
def _make_bottleneck_kernel(H, W, stride, has_shortcut):
    Ho = (H - 1) // stride + 1
    Wo = (W - 1) // stride + 1

    def kernel(*refs):
        if has_shortcut:
            (x_ref, w1_ref, b1_ref, w2_ref, b2_ref, w3_ref, b3_ref,
             ws_ref, bs_ref, o_ref, y1s) = refs
        else:
            (x_ref, w1_ref, b1_ref, w2_ref, b2_ref, w3_ref, b3_ref,
             o_ref, y1s) = refs
            ws_ref = bs_ref = None

        Cp = x_ref.shape[-1]      # padded in_channels
        Wp = w1_ref.shape[-1]     # padded bottleneck width
        Op = w3_ref.shape[-1]     # padded output channels

        # ---- conv1 (1x1) + folded BN + ReLU (bf16 MXU, f32 accumulate) ------
        x3 = x_ref[0]                                  # (H, W, Cp) bf16
        x2d = x3.reshape(H * W, Cp)
        y1 = jnp.dot(x2d, w1_ref[...], preferred_element_type=jnp.float32)
        y1 = jnp.maximum(y1 + b1_ref[...], 0.0)        # f32

        # ---- stage conv1 output in a zero-padded VMEM halo buffer -----------
        # Border stays zero across the grid; only clear it once.
        @pl.when(pl.program_id(0) == 0)
        def _():
            y1s[...] = jnp.zeros_like(y1s)
        y1s[1:H + 1, 1:W + 1, :] = y1.reshape(H, W, Wp)

        # ---- conv2 (3x3, pad=1, stride) as a 9-tap VMEM accumulation --------
        acc = jnp.zeros((Ho * Wo, Wp), jnp.float32)
        for t in range(9):
            ky, kx = t // 3, t % 3
            if stride == 1:
                patch = y1s[ky:ky + Ho, kx:kx + Wo, :]
            else:
                patch = y1s[ky:ky + (Ho - 1) * stride + 1:stride,
                            kx:kx + (Wo - 1) * stride + 1:stride, :]
            acc = acc + jnp.dot(
                patch.reshape(Ho * Wo, Wp).astype(jnp.bfloat16), w2_ref[t],
                preferred_element_type=jnp.float32)
        y2 = jnp.maximum(acc + b2_ref[...], 0.0).astype(jnp.bfloat16)

        # ---- conv3 (1x1) + folded BN ----------------------------------------
        y3 = jnp.dot(y2, w3_ref[...], preferred_element_type=jnp.float32)
        y3 = y3 + b3_ref[...]

        # ---- shortcut --------------------------------------------------------
        if has_shortcut:
            if stride == 1:
                xs2d = x2d
            else:
                xs2d = x3[::stride, ::stride, :].reshape(Ho * Wo, Cp)
            skip = jnp.dot(xs2d, ws_ref[...], preferred_element_type=jnp.float32)
            skip = skip + bs_ref[...]
        else:
            # identity shortcut (valid ResNet configs: Cin == out_c, stride == 1)
            skip = x2d.astype(jnp.float32)

        out = jnp.maximum(y3 + skip, 0.0)
        o_ref[...] = out.reshape(1, Ho, Wo, Op).astype(o_ref.dtype)

    return kernel


def bottleneck_forward(x_nchw, folded, *, out_c, stride=1, has_shortcut=True):
    N, Cin, H, W = x_nchw.shape
    Cp, Wp = folded["w1"].shape
    Op = folded["w3"].shape[1]
    Ho = (H - 1) // stride + 1
    Wo = (W - 1) // stride + 1
    if not has_shortcut:
        assert stride == 1 and Cin == out_c, "identity shortcut needs matching shape"

    # NCHW -> NHWC, bf16, zero-pad channels to the lane-dense width used by the
    # kernel (no-op for real ResNet channel counts, which are multiples of 128).
    x = jnp.transpose(x_nchw, (0, 2, 3, 1)).astype(jnp.bfloat16)
    if Cp > Cin:
        x = jnp.pad(x, ((0, 0), (0, 0), (0, 0), (0, Cp - Cin)))

    args = [x, folded["w1"], folded["b1"], folded["w2"], folded["b2"],
            folded["w3"], folded["b3"]]
    # Weight / bias blocks are constant across the grid (index_map always 0),
    # so they are fetched once; at these sizes the default double-buffering
    # overhead is negligible (use a one-time DMA for very large weights).
    in_specs = [
        pl.BlockSpec((1, H, W, Cp), lambda n: (n, 0, 0, 0)),
        pl.BlockSpec((Cp, Wp), lambda n: (0, 0)),
        pl.BlockSpec((1, Wp), lambda n: (0, 0)),
        pl.BlockSpec((9, Wp, Wp), lambda n: (0, 0, 0)),
        pl.BlockSpec((1, Wp), lambda n: (0, 0)),
        pl.BlockSpec((Wp, Op), lambda n: (0, 0)),
        pl.BlockSpec((1, Op), lambda n: (0, 0)),
    ]
    if has_shortcut:
        args += [folded["ws"], folded["bs"]]
        in_specs += [
            pl.BlockSpec((Cp, Op), lambda n: (0, 0)),
            pl.BlockSpec((1, Op), lambda n: (0, 0)),
        ]

    out = pl.pallas_call(
        _make_bottleneck_kernel(H, W, stride, has_shortcut),
        out_shape=jax.ShapeDtypeStruct((N, Ho, Wo, Op), jnp.float32),
        grid=(N,),
        in_specs=in_specs,
        out_specs=pl.BlockSpec((1, Ho, Wo, Op), lambda n: (n, 0, 0, 0)),
        scratch_shapes=[pltpu.VMEM((H + 2, W + 2, Wp), jnp.float32)],
        compiler_params=pltpu.CompilerParams(
            dimension_semantics=("parallel",)),
    )(*args)

    out = out[:, :, :, :out_c]                 # drop lane padding (static slice)
    return jnp.transpose(out, (0, 3, 1, 2))    # NHWC -> NCHW


# ----------------------------------------------------------------------------
# Parameter construction + BatchNorm folding (scale folded into weights)
# ----------------------------------------------------------------------------
def _fold_bn(conv_bias, gamma, beta, mean, var):
    scale = gamma / jnp.sqrt(var + BN_EPS)
    bias = beta + (conv_bias - mean) * scale
    return scale, bias


def _pad_to(a, shape):
    return jnp.pad(a, [(0, t - s) for s, t in zip(a.shape, shape)])


def init_params(key, in_channels, channels, stride=1, groups=1, width_per_group=64):
    assert groups == 1  # TODO(synk): grouped 3x3 conv (groups > 1) not implemented
    expansion = 4
    width = int(channels * (width_per_group / 64.0)) * groups
    out_c = channels * expansion

    def conv_p(k, o, i, kh, kw):
        k1, k2 = jax.random.split(k)
        w = jax.random.normal(k1, (o, i, kh, kw), jnp.float32) * 0.1
        b = jax.random.normal(k2, (o,), jnp.float32) * 0.1
        return w, b

    def bn_p(k, c):
        k1, k2, k3, k4 = jax.random.split(k, 4)
        gamma = 1.0 + 0.1 * jax.random.normal(k1, (c,), jnp.float32)
        beta = 0.1 * jax.random.normal(k2, (c,), jnp.float32)
        mean = 0.1 * jax.random.normal(k3, (c,), jnp.float32)
        var = 1.0 + 0.1 * jnp.abs(jax.random.normal(k4, (c,), jnp.float32))
        return gamma, beta, mean, var

    ks = jax.random.split(key, 8)
    raw = {
        "conv1": conv_p(ks[0], width, in_channels, 1, 1),
        "bn1": bn_p(ks[1], width),
        "conv2": conv_p(ks[2], width, width, 3, 3),
        "bn2": bn_p(ks[3], width),
        "conv3": conv_p(ks[4], out_c, width, 1, 1),
        "bn3": bn_p(ks[5], out_c),
    }
    has_shortcut = stride != 1 or in_channels != out_c
    if has_shortcut:
        raw["convs"] = conv_p(ks[6], out_c, in_channels, 1, 1)
        raw["bns"] = bn_p(ks[7], out_c)

    # Folded params for the Pallas path: BN scale folded into weight columns,
    # channels zero-padded to lane width, weights cast to bf16, biases f32.
    Cp = _round_up(in_channels, LANE)
    Wp = _round_up(width, LANE)
    Op = _round_up(out_c, LANE)
    folded = {}

    w1, cb1 = raw["conv1"]
    s1, b1 = _fold_bn(cb1, *raw["bn1"])
    folded["w1"] = _pad_to(w1[:, :, 0, 0].T * s1[None, :], (Cp, Wp)).astype(jnp.bfloat16)
    folded["b1"] = _pad_to(b1[None, :], (1, Wp))

    w2, cb2 = raw["conv2"]
    s2, b2 = _fold_bn(cb2, *raw["bn2"])
    w2f = jnp.transpose(w2, (2, 3, 1, 0)).reshape(9, width, width) * s2[None, None, :]
    folded["w2"] = _pad_to(w2f, (9, Wp, Wp)).astype(jnp.bfloat16)
    folded["b2"] = _pad_to(b2[None, :], (1, Wp))

    w3, cb3 = raw["conv3"]
    s3, b3 = _fold_bn(cb3, *raw["bn3"])
    folded["w3"] = _pad_to(w3[:, :, 0, 0].T * s3[None, :], (Wp, Op)).astype(jnp.bfloat16)
    folded["b3"] = _pad_to(b3[None, :], (1, Op))

    if has_shortcut:
        ws, cbs = raw["convs"]
        ss, bs = _fold_bn(cbs, *raw["bns"])
        folded["ws"] = _pad_to(ws[:, :, 0, 0].T * ss[None, :], (Cp, Op)).astype(jnp.bfloat16)
        folded["bs"] = _pad_to(bs[None, :], (1, Op))

    return raw, folded, has_shortcut, out_c


# ----------------------------------------------------------------------------
# Pure-JAX f32 reference (NCHW, eval-mode semantics of the PyTorch module)
# ----------------------------------------------------------------------------
def _conv_nchw(x, w, b, stride=1, padding=0):
    y = jax.lax.conv_general_dilated(
        x, w, (stride, stride), [(padding, padding)] * 2,
        dimension_numbers=("NCHW", "OIHW", "NCHW"))
    return y + b[None, :, None, None]


def _bn_nchw(x, gamma, beta, mean, var):
    inv = gamma / jnp.sqrt(var + BN_EPS)
    return (x - mean[None, :, None, None]) * inv[None, :, None, None] + beta[None, :, None, None]


def bottleneck_reference(x, raw, *, stride=1, has_shortcut=True):
    if has_shortcut:
        skip = _bn_nchw(_conv_nchw(x, *raw["convs"], stride=stride), *raw["bns"])
    else:
        skip = x
    y = jax.nn.relu(_bn_nchw(_conv_nchw(x, *raw["conv1"]), *raw["bn1"]))
    y = jax.nn.relu(_bn_nchw(_conv_nchw(y, *raw["conv2"], stride=stride, padding=1), *raw["bn2"]))
    y = _bn_nchw(_conv_nchw(y, *raw["conv3"]), *raw["bn3"])
    return jax.nn.relu(y + skip)


# ----------------------------------------------------------------------------
if __name__ == "__main__":
    key = jax.random.PRNGKey(0)
    kx, kp = jax.random.split(key)

    # BottleNeckBlock(in_channels=16, channels=8, stride=1) -> out channels 32
    in_channels, channels, stride = 16, 8, 1
    N, H, W = 2, 16, 16
    x = jax.random.normal(kx, (N, in_channels, H, W), jnp.float32)  # NCHW

    raw, folded, has_shortcut, out_c = init_params(kp, in_channels, channels, stride=stride)

    fwd = jax.jit(functools.partial(bottleneck_forward, stride=stride,
                                    has_shortcut=has_shortcut, out_c=out_c))
    out = jax.block_until_ready(fwd(x, folded))

    ref = bottleneck_reference(x, raw, stride=stride, has_shortcut=has_shortcut)
    assert out.shape == ref.shape == (N, channels * 4, H, W), out.shape
    max_err = float(jnp.max(jnp.abs(out - ref)))
    # bf16 matmul path vs. f32 reference -> loosened tolerance
    assert jnp.allclose(out, ref, rtol=5e-2, atol=1e-1), max_err

    print("KERNEL_OK")
</pallas_src>

<mosaic_0001>
module attributes {stable_mosaic.version = 11 : i64} {
  func.func @kernel(%arg0: i32, %arg1: memref<1x16x16x128xbf16, #tpu.memory_space<vmem>>, %arg2: memref<128x128xbf16, #tpu.memory_space<vmem>>, %arg3: memref<1x128xf32, #tpu.memory_space<vmem>>, %arg4: memref<9x128x128xbf16, #tpu.memory_space<vmem>>, %arg5: memref<1x128xf32, #tpu.memory_space<vmem>>, %arg6: memref<128x128xbf16, #tpu.memory_space<vmem>>, %arg7: memref<1x128xf32, #tpu.memory_space<vmem>>, %arg8: memref<128x128xbf16, #tpu.memory_space<vmem>>, %arg9: memref<1x128xf32, #tpu.memory_space<vmem>>, %arg10: memref<1x16x16x128xf32, #tpu.memory_space<vmem>>, %arg11: memref<18x18x128xf32, #tpu.memory_space<vmem>>) attributes {dimension_semantics = [#tpu.dimension_semantics<parallel>], iteration_bounds = array<i64: 2>, scalar_prefetch = 0 : i64, scratch_operands = 1 : i64, tpu.core_type = #tpu.core_type<tc>, window_params = [{transform_indices = @transform_0, window_bounds = array<i64: 1, 16, 16, 128>}, {pipeline_mode = #tpu.pipeline_mode<synchronous>, transform_indices = @transform_1, window_bounds = array<i64: 128, 128>}, {pipeline_mode = #tpu.pipeline_mode<synchronous>, transform_indices = @transform_2, window_bounds = array<i64: 1, 128>}, {pipeline_mode = #tpu.pipeline_mode<synchronous>, transform_indices = @transform_3, window_bounds = array<i64: 9, 128, 128>}, {pipeline_mode = #tpu.pipeline_mode<synchronous>, transform_indices = @transform_4, window_bounds = array<i64: 1, 128>}, {pipeline_mode = #tpu.pipeline_mode<synchronous>, transform_indices = @transform_5, window_bounds = array<i64: 128, 128>}, {pipeline_mode = #tpu.pipeline_mode<synchronous>, transform_indices = @transform_6, window_bounds = array<i64: 1, 128>}, {pipeline_mode = #tpu.pipeline_mode<synchronous>, transform_indices = @transform_7, window_bounds = array<i64: 128, 128>}, {pipeline_mode = #tpu.pipeline_mode<synchronous>, transform_indices = @transform_8, window_bounds = array<i64: 1, 128>}, {transform_indices = @transform_9, window_bounds = array<i64: 1, 16, 16, 128>}]} {
    %c0 = arith.constant 0 : index
    %c0_0 = arith.constant 0 : index
    %c0_1 = arith.constant 0 : index
    %c0_2 = arith.constant 0 : index
    %0 = vector.load %arg1[%c0, %c0_0, %c0_1, %c0_2] : memref<1x16x16x128xbf16, #tpu.memory_space<vmem>>, vector<1x16x16x128xbf16>
    %1 = vector.shape_cast %0 : vector<1x16x16x128xbf16> to vector<16x16x128xbf16>
    %2 = vector.shape_cast %1 : vector<16x16x128xbf16> to vector<256x128xbf16>
    %c0_3 = arith.constant 0 : index
    %c0_4 = arith.constant 0 : index
    %3 = vector.load %arg2[%c0_3, %c0_4] : memref<128x128xbf16, #tpu.memory_space<vmem>>, vector<128x128xbf16>
    %cst = arith.constant dense<0.000000e+00> : vector<256x128xf32>
    %4 = tpu.matmul %2, %3, %cst {dimension_numbers = #tpu.dot_dimension_numbers<[1], [0], [0], [1], [0, 0, 1, 1], [], []>} : vector<256x128xbf16>, vector<128x128xbf16>, vector<256x128xf32> -> vector<256x128xf32>
    %c0_5 = arith.constant 0 : index
    %c0_6 = arith.constant 0 : index
    %5 = vector.load %arg3[%c0_5, %c0_6] : memref<1x128xf32, #tpu.memory_space<vmem>>, vector<1x128xf32>
    %6 = vector.broadcast %5 : vector<1x128xf32> to vector<256x128xf32>
    %7 = arith.addf %4, %6 : vector<256x128xf32>
    %cst_7 = arith.constant 0.000000e+00 : f32
    %8 = vector.broadcast %cst_7 : f32 to vector<256x128xf32>
    %9 = arith.maximumf %7, %8 : vector<256x128xf32>
    %c0_i32 = arith.constant 0 : i32
    %10 = arith.cmpi eq, %arg0, %c0_i32 : i32
    %11 = arith.extui %10 : i1 to i32
    %c0_i32_8 = arith.constant 0 : i32
    %12 = arith.cmpi ne, %11, %c0_i32_8 : i32
    scf.if %12 {
      %cst_86 = arith.constant 0.000000e+00 : f32
      %100 = vector.broadcast %cst_86 : f32 to vector<18x18x128xf32>
      %c0_87 = arith.constant 0 : index
      %c0_88 = arith.constant 0 : index
      %c0_89 = arith.constant 0 : index
      %101 = vector.load %arg11[%c0_87, %c0_88, %c0_89] : memref<18x18x128xf32, #tpu.memory_space<vmem>>, vector<18x18x128xf32>
      tpu.vector_store %arg11[%c0_87, %c0_88, %c0_89], %100 {strides = array<i32>} : memref<18x18x128xf32, #tpu.memory_space<vmem>>, vector<18x18x128xf32>,
    } else {
    }
    %13 = vector.shape_cast %9 : vector<256x128xf32> to vector<16x16x128xf32>
    %c1 = arith.constant 1 : index
    %c1_9 = arith.constant 1 : index
    %c0_10 = arith.constant 0 : index
    %14 = vector.load %arg11[%c1, %c1_9, %c0_10] : memref<18x18x128xf32, #tpu.memory_space<vmem>>, vector<16x16x128xf32>
    tpu.vector_store %arg11[%c1, %c1_9, %c0_10], %13 {strides = array<i32>} : memref<18x18x128xf32, #tpu.memory_space<vmem>>, vector<16x16x128xf32>,
    %cst_11 = arith.constant 0.000000e+00 : f32
    %15 = vector.broadcast %cst_11 : f32 to vector<256x128xf32>
    %c0_12 = arith.constant 0 : index
    %c0_13 = arith.constant 0 : index
    %c0_14 = arith.constant 0 : index
    %16 = vector.load %arg11[%c0_12, %c0_13, %c0_14] : memref<18x18x128xf32, #tpu.memory_space<vmem>>, vector<16x16x128xf32>
    %17 = vector.shape_cast %16 : vector<16x16x128xf32> to vector<256x128xf32>
    %18 = arith.truncf %17 : vector<256x128xf32> to vector<256x128xbf16>
    %c0_15 = arith.constant 0 : index
    %c0_16 = arith.constant 0 : index
    %c0_17 = arith.constant 0 : index
    %19 = vector.load %arg4[%c0_15, %c0_16, %c0_17] : memref<9x128x128xbf16, #tpu.memory_space<vmem>>, vector<1x128x128xbf16>
    %20 = vector.shape_cast %19 : vector<1x128x128xbf16> to vector<128x128xbf16>
    %cst_18 = arith.constant dense<0.000000e+00> : vector<256x128xf32>
    %21 = tpu.matmul %18, %20, %cst_18 {dimension_numbers = #tpu.dot_dimension_numbers<[1], [0], [0], [1], [0, 0, 1, 1], [], []>} : vector<256x128xbf16>, vector<128x128xbf16>, vector<256x128xf32> -> vector<256x128xf32>
    %22 = arith.addf %15, %21 : vector<256x128xf32>
    %c0_19 = arith.constant 0 : index
    %c1_20 = arith.constant 1 : index
    %c0_21 = arith.constant 0 : index
    %23 = vector.load %arg11[%c0_19, %c1_20, %c0_21] : memref<18x18x128xf32, #tpu.memory_space<vmem>>, vector<16x16x128xf32>
    %24 = vector.shape_cast %23 : vector<16x16x128xf32> to vector<256x128xf32>
    %25 = arith.truncf %24 : vector<256x128xf32> to vector<256x128xbf16>
    %c1_22 = arith.constant 1 : index
    %c0_23 = arith.constant 0 : index
    %c0_24 = arith.constant 0 : index
    %26 = vector.load %arg4[%c1_22, %c0_23, %c0_24] : memref<9x128x128xbf16, #tpu.memory_space<vmem>>, vector<1x128x128xbf16>
    %27 = vector.shape_cast %26 : vector<1x128x128xbf16> to vector<128x128xbf16>
    %cst_25 = arith.constant dense<0.000000e+00> : vector<256x128xf32>
    %28 = tpu.matmul %25, %27, %cst_25 {dimension_numbers = #tpu.dot_dimension_numbers<[1], [0], [0], [1], [0, 0, 1, 1], [], []>} : vector<256x128xbf16>, vector<128x128xbf16>, vector<256x128xf32> -> vector<256x128xf32>
    %29 = arith.addf %22, %28 : vector<256x128xf32>
    %c0_26 = arith.constant 0 : index
    %c2 = arith.constant 2 : index
    %c0_27 = arith.constant 0 : index
    %30 = vector.load %arg11[%c0_26, %c2, %c0_27] : memref<18x18x128xf32, #tpu.memory_space<vmem>>, vector<16x16x128xf32>
    %31 = vector.shape_cast %30 : vector<16x16x128xf32> to vector<256x128xf32>
    %32 = arith.truncf %31 : vector<256x128xf32> to vector<256x128xbf16>
    %c2_28 = arith.constant 2 : index
    %c0_29 = arith.constant 0 : index
    %c0_30 = arith.constant 0 : index
    %33 = vector.load %arg4[%c2_28, %c0_29, %c0_30] : memref<9x128x128xbf16, #tpu.memory_space<vmem>>, vector<1x128x128xbf16>
    %34 = vector.shape_cast %33 : vector<1x128x128xbf16> to vector<128x128xbf16>
    %cst_31 = arith.constant dense<0.000000e+00> : vector<256x128xf32>
    %35 = tpu.matmul %32, %34, %cst_31 {dimension_numbers = #tpu.dot_dimension_numbers<[1], [0], [0], [1], [0, 0, 1, 1], [], []>} : vector<256x128xbf16>, vector<128x128xbf16>, vector<256x128xf32> -> vector<256x128xf32>
    %36 = arith.addf %29, %35 : vector<256x128xf32>
    %c1_32 = arith.constant 1 : index
    %c0_33 = arith.constant 0 : index
    %c0_34 = arith.constant 0 : index
    %37 = vector.load %arg11[%c1_32, %c0_33, %c0_34] : memref<18x18x128xf32, #tpu.memory_space<vmem>>, vector<16x16x128xf32>
    %38 = vector.shape_cast %37 : vector<16x16x128xf32> to vector<256x128xf32>
    %39 = arith.truncf %38 : vector<256x128xf32> to vector<256x128xbf16>
    %c3 = arith.constant 3 : index
    %c0_35 = arith.constant 0 : index
    %c0_36 = arith.constant 0 : index
    %40 = vector.load %arg4[%c3, %c0_35, %c0_36] : memref<9x128x128xbf16, #tpu.memory_space<vmem>>, vector<1x128x128xbf16>
    %41 = vector.shape_cast %40 : vector<1x128x128xbf16> to vector<128x128xbf16>
    %cst_37 = arith.constant dense<0.000000e+00> : vector<256x128xf32>
    %42 = tpu.matmul %39, %41, %cst_37 {dimension_numbers = #tpu.dot_dimension_numbers<[1], [0], [0], [1], [0, 0, 1, 1], [], []>} : vector<256x128xbf16>, vector<128x128xbf16>, vector<256x128xf32> -> vector<256x128xf32>
    %43 = arith.addf %36, %42 : vector<256x128xf32>
    %c1_38 = arith.constant 1 : index
    %c1_39 = arith.constant 1 : index
    %c0_40 = arith.constant 0 : index
    %44 = vector.load %arg11[%c1_38, %c1_39, %c0_40] : memref<18x18x128xf32, #tpu.memory_space<vmem>>, vector<16x16x128xf32>
    %45 = vector.shape_cast %44 : vector<16x16x128xf32> to vector<256x128xf32>
    %46 = arith.truncf %45 : vector<256x128xf32> to vector<256x128xbf16>
    %c4 = arith.constant 4 : index
    %c0_41 = arith.constant 0 : index
    %c0_42 = arith.constant 0 : index
    %47 = vector.load %arg4[%c4, %c0_41, %c0_42] : memref<9x128x128xbf16, #tpu.memory_space<vmem>>, vector<1x128x128xbf16>
    %48 = vector.shape_cast %47 : vector<1x128x128xbf16> to vector<128x128xbf16>
    %cst_43 = arith.constant dense<0.000000e+00> : vector<256x128xf32>
    %49 = tpu.matmul %46, %48, %cst_43 {dimension_numbers = #tpu.dot_dimension_numbers<[1], [0], [0], [1], [0, 0, 1, 1], [], []>} : vector<256x128xbf16>, vector<128x128xbf16>, vector<256x128xf32> -> vector<256x128xf32>
    %50 = arith.addf %43, %49 : vector<256x128xf32>
    %c1_44 = arith.constant 1 : index
    %c2_45 = arith.constant 2 : index
    %c0_46 = arith.constant 0 : index
    %51 = vector.load %arg11[%c1_44, %c2_45, %c0_46] : memref<18x18x128xf32, #tpu.memory_space<vmem>>, vector<16x16x128xf32>
    %52 = vector.shape_cast %51 : vector<16x16x128xf32> to vector<256x128xf32>
    %53 = arith.truncf %52 : vector<256x128xf32> to vector<256x128xbf16>
    %c5 = arith.constant 5 : index
    %c0_47 = arith.constant 0 : index
    %c0_48 = arith.constant 0 : index
    %54 = vector.load %arg4[%c5, %c0_47, %c0_48] : memref<9x128x128xbf16, #tpu.memory_space<vmem>>, vector<1x128x128xbf16>
    %55 = vector.shape_cast %54 : vector<1x128x128xbf16> to vector<128x128xbf16>
    %cst_49 = arith.constant dense<0.000000e+00> : vector<256x128xf32>
    %56 = tpu.matmul %53, %55, %cst_49 {dimension_numbers = #tpu.dot_dimension_numbers<[1], [0], [0], [1], [0, 0, 1, 1], [], []>} : vector<256x128xbf16>, vector<128x128xbf16>, vector<256x128xf32> -> vector<256x128xf32>
    %57 = arith.addf %50, %56 : vector<256x128xf32>
    %c2_50 = arith.constant 2 : index
    %c0_51 = arith.constant 0 : index
    %c0_52 = arith.constant 0 : index
    %58 = vector.load %arg11[%c2_50, %c0_51, %c0_52] : memref<18x18x128xf32, #tpu.memory_space<vmem>>, vector<16x16x128xf32>
    %59 = vector.shape_cast %58 : vector<16x16x128xf32> to vector<256x128xf32>
    %60 = arith.truncf %59 : vector<256x128xf32> to vector<256x128xbf16>
    %c6 = arith.constant 6 : index
    %c0_53 = arith.constant 0 : index
    %c0_54 = arith.constant 0 : index
    %61 = vector.load %arg4[%c6, %c0_53, %c0_54] : memref<9x128x128xbf16, #tpu.memory_space<vmem>>, vector<1x128x128xbf16>
    %62 = vector.shape_cast %61 : vector<1x128x128xbf16> to vector<128x128xbf16>
    %cst_55 = arith.constant dense<0.000000e+00> : vector<256x128xf32>
    %63 = tpu.matmul %60, %62, %cst_55 {dimension_numbers = #tpu.dot_dimension_numbers<[1], [0], [0], [1], [0, 0, 1, 1], [], []>} : vector<256x128xbf16>, vector<128x128xbf16>, vector<256x128xf32> -> vector<256x128xf32>
    %64 = arith.addf %57, %63 : vector<256x128xf32>
    %c2_56 = arith.constant 2 : index
    %c1_57 = arith.constant 1 : index
    %c0_58 = arith.constant 0 : index
    %65 = vector.load %arg11[%c2_56, %c1_57, %c0_58] : memref<18x18x128xf32, #tpu.memory_space<vmem>>, vector<16x16x128xf32>
    %66 = vector.shape_cast %65 : vector<16x16x128xf32> to vector<256x128xf32>
    %67 = arith.truncf %66 : vector<256x128xf32> to vector<256x128xbf16>
    %c7 = arith.constant 7 : index
    %c0_59 = arith.constant 0 : index
    %c0_60 = arith.constant 0 : index
    %68 = vector.load %arg4[%c7, %c0_59, %c0_60] : memref<9x128x128xbf16, #tpu.memory_space<vmem>>, vector<1x128x128xbf16>
    %69 = vector.shape_cast %68 : vector<1x128x128xbf16> to vector<128x128xbf16>
    %cst_61 = arith.constant dense<0.000000e+00> : vector<256x128xf32>
    %70 = tpu.matmul %67, %69, %cst_61 {dimension_numbers = #tpu.dot_dimension_numbers<[1], [0], [0], [1], [0, 0, 1, 1], [], []>} : vector<256x128xbf16>, vector<128x128xbf16>, vector<256x128xf32> -> vector<256x128xf32>
    %71 = arith.addf %64, %70 : vector<256x128xf32>
    %c2_62 = arith.constant 2 : index
    %c2_63 = arith.constant 2 : index
    %c0_64 = arith.constant 0 : index
    %72 = vector.load %arg11[%c2_62, %c2_63, %c0_64] : memref<18x18x128xf32, #tpu.memory_space<vmem>>, vector<16x16x128xf32>
    %73 = vector.shape_cast %72 : vector<16x16x128xf32> to vector<256x128xf32>
    %74 = arith.truncf %73 : vector<256x128xf32> to vector<256x128xbf16>
    %c8 = arith.constant 8 : index
    %c0_65 = arith.constant 0 : index
    %c0_66 = arith.constant 0 : index
    %75 = vector.load %arg4[%c8, %c0_65, %c0_66] : memref<9x128x128xbf16, #tpu.memory_space<vmem>>, vector<1x128x128xbf16>
    %76 = vector.shape_cast %75 : vector<1x128x128xbf16> to vector<128x128xbf16>
    %cst_67 = arith.constant dense<0.000000e+00> : vector<256x128xf32>
    %77 = tpu.matmul %74, %76, %cst_67 {dimension_numbers = #tpu.dot_dimension_numbers<[1], [0], [0], [1], [0, 0, 1, 1], [], []>} : vector<256x128xbf16>, vector<128x128xbf16>, vector<256x128xf32> -> vector<256x128xf32>
    %78 = arith.addf %71, %77 : vector<256x128xf32>
    %c0_68 = arith.constant 0 : index
    %c0_69 = arith.constant 0 : index
    %79 = vector.load %arg5[%c0_68, %c0_69] : memref<1x128xf32, #tpu.memory_space<vmem>>, vector<1x128xf32>
    %80 = vector.broadcast %79 : vector<1x128xf32> to vector<256x128xf32>
    %81 = arith.addf %78, %80 : vector<256x128xf32>
    %cst_70 = arith.constant 0.000000e+00 : f32
    %82 = vector.broadcast %cst_70 : f32 to vector<256x128xf32>
    %83 = arith.maximumf %81, %82 : vector<256x128xf32>
    %84 = arith.truncf %83 : vector<256x128xf32> to vector<256x128xbf16>
    %c0_71 = arith.constant 0 : index
    %c0_72 = arith.constant 0 : index
    %85 = vector.load %arg6[%c0_71, %c0_72] : memref<128x128xbf16, #tpu.memory_space<vmem>>, vector<128x128xbf16>
    %cst_73 = arith.constant dense<0.000000e+00> : vector<256x128xf32>
    %86 = tpu.matmul %84, %85, %cst_73 {dimension_numbers = #tpu.dot_dimension_numbers<[1], [0], [0], [1], [0, 0, 1, 1], [], []>} : vector<256x128xbf16>, vector<128x128xbf16>, vector<256x128xf32> -> vector<256x128xf32>
    %c0_74 = arith.constant 0 : index
    %c0_75 = arith.constant 0 : index
    %87 = vector.load %arg7[%c0_74, %c0_75] : memref<1x128xf32, #tpu.memory_space<vmem>>, vector<1x128xf32>
    %88 = vector.broadcast %87 : vector<1x128xf32> to vector<256x128xf32>
    %89 = arith.addf %86, %88 : vector<256x128xf32>
    %c0_76 = arith.constant 0 : index
    %c0_77 = arith.constant 0 : index
    %90 = vector.load %arg8[%c0_76, %c0_77] : memref<128x128xbf16, #tpu.memory_space<vmem>>, vector<128x128xbf16>
    %cst_78 = arith.constant dense<0.000000e+00> : vector<256x128xf32>
    %91 = tpu.matmul %2, %90, %cst_78 {dimension_numbers = #tpu.dot_dimension_numbers<[1], [0], [0], [1], [0, 0, 1, 1], [], []>} : vector<256x128xbf16>, vector<128x128xbf16>, vector<256x128xf32> -> vector<256x128xf32>
    %c0_79 = arith.constant 0 : index
    %c0_80 = arith.constant 0 : index
    %92 = vector.load %arg9[%c0_79, %c0_80] : memref<1x128xf32, #tpu.memory_space<vmem>>, vector<1x128xf32>
    %93 = vector.broadcast %92 : vector<1x128xf32> to vector<256x128xf32>
    %94 = arith.addf %91, %93 : vector<256x128xf32>
    %95 = arith.addf %89, %94 : vector<256x128xf32>
    %cst_81 = arith.constant 0.000000e+00 : f32
    %96 = vector.broadcast %cst_81 : f32 to vector<256x128xf32>
    %97 = arith.maximumf %95, %96 : vector<256x128xf32>
    %98 = vector.shape_cast %97 : vector<256x128xf32> to vector<1x16x16x128xf32>
    %c0_82 = arith.constant 0 : index
    %c0_83 = arith.constant 0 : index
    %c0_84 = arith.constant 0 : index
    %c0_85 = arith.constant 0 : index
    %99 = vector.load %arg10[%c0_82, %c0_83, %c0_84, %c0_85] : memref<1x16x16x128xf32, #tpu.memory_space<vmem>>, vector<1x16x16x128xf32>
    tpu.vector_store %arg10[%c0_82, %c0_83, %c0_84, %c0_85], %98 {strides = array<i32>} : memref<1x16x16x128xf32, #tpu.memory_space<vmem>>, vector<1x16x16x128xf32>,
    return
  }
  func.func @transform_0(%arg0: i32) -> (i32, i32, i32, i32) {
    %c0_i32 = arith.constant 0 : i32
    %c0_i32_0 = arith.constant 0 : i32
    %c0_i32_1 = arith.constant 0 : i32
    %c0_i32_2 = arith.constant 0 : i32
    return %arg0, %c0_i32, %c0_i32_0, %c0_i32_1 : i32, i32, i32, i32
  }
  func.func @transform_1(%arg0: i32) -> (i32, i32) {
    %c0_i32 = arith.constant 0 : i32
    %c0_i32_0 = arith.constant 0 : i32
    %c0_i32_1 = arith.constant 0 : i32
    return %c0_i32, %c0_i32_0 : i32, i32
  }
  func.func @transform_2(%arg0: i32) -> (i32, i32) {
    %c0_i32 = arith.constant 0 : i32
    %c0_i32_0 = arith.constant 0 : i32
    %c0_i32_1 = arith.constant 0 : i32
    return %c0_i32, %c0_i32_0 : i32, i32
  }
  func.func @transform_3(%arg0: i32) -> (i32, i32, i32) {
    %c0_i32 = arith.constant 0 : i32
    %c0_i32_0 = arith.constant 0 : i32
    %c0_i32_1 = arith.constant 0 : i32
    %c0_i32_2 = arith.constant 0 : i32
    return %c0_i32, %c0_i32_0, %c0_i32_1 : i32, i32, i32
  }
  func.func @transform_4(%arg0: i32) -> (i32, i32) {
    %c0_i32 = arith.constant 0 : i32
    %c0_i32_0 = arith.constant 0 : i32
    %c0_i32_1 = arith.constant 0 : i32
    return %c0_i32, %c0_i32_0 : i32, i32
  }
  func.func @transform_5(%arg0: i32) -> (i32, i32) {
    %c0_i32 = arith.constant 0 : i32
    %c0_i32_0 = arith.constant 0 : i32
    %c0_i32_1 = arith.constant 0 : i32
    return %c0_i32, %c0_i32_0 : i32, i32
  }
  func.func @transform_6(%arg0: i32) -> (i32, i32) {
    %c0_i32 = arith.constant 0 : i32
    %c0_i32_0 = arith.constant 0 : i32
    %c0_i32_1 = arith.constant 0 : i32
    return %c0_i32, %c0_i32_0 : i32, i32
  }
  func.func @transform_7(%arg0: i32) -> (i32, i32) {
    %c0_i32 = arith.constant 0 : i32
    %c0_i32_0 = arith.constant 0 : i32
    %c0_i32_1 = arith.constant 0 : i32
    return %c0_i32, %c0_i32_0 : i32, i32
  }
  func.func @transform_8(%arg0: i32) -> (i32, i32) {
    %c0_i32 = arith.constant 0 : i32
    %c0_i32_0 = arith.constant 0 : i32
    %c0_i32_1 = arith.constant 0 : i32
    return %c0_i32, %c0_i32_0 : i32, i32
  }
  func.func @transform_9(%arg0: i32) -> (i32, i32, i32, i32) {
    %c0_i32 = arith.constant 0 : i32
    %c0_i32_0 = arith.constant 0 : i32
    %c0_i32_1 = arith.constant 0 : i32
    %c0_i32_2 = arith.constant 0 : i32
    return %arg0, %c0_i32, %c0_i32_0, %c0_i32_1 : i32, i32, i32, i32
  }
}

</mosaic_0001>

<bundles_post_ra>
// kernel: bottleneck_forward.1
= control target key start
LH: loop header
LB: loop body
LE: loop exit
PB: predicated region body
PF: predicated region fallthrough
CT: control target
= control target key end

     0   :  { %s5863_s30 = smov 0   ;;  %s6890_s0 = inlined_call_operand.vmem [shape: bf16[2,16,16,128], index: 0, kind: input, shape index: {}]   ;;  %s6891_s1 = inlined_call_operand.vmem [shape: bf16[128,128], index: 1, kind: input, shape index: {}]   ;;  %s6892_s2 = inlined_call_operand.vmem [shape: f32[1,128], index: 2, kind: input, shape index: {}]   ;;  %s6893_s3 = inlined_call_operand.vmem [shape: bf16[9,128,128], index: 3, kind: input, shape index: {}]   ;;  %s6894_s4 = inlined_call_operand.vmem [shape: f32[1,128], index: 4, kind: input, shape index: {}]   ;;  %s6895_s5 = inlined_call_operand.vmem [shape: bf16[128,128], index: 5, kind: input, shape index: {}]   ;;  %s6896_s6 = inlined_call_operand.vmem [shape: f32[1,128], index: 6, kind: input, shape index: {}]   ;;  %s6897_s7 = inlined_call_operand.vmem [shape: bf16[128,128], index: 7, kind: input, shape index: {}]   ;;  %s6898_s8 = inlined_call_operand.vmem [shape: f32[1,128], index: 8, kind: input, shape index: {}]   ;;  %s6899_s9 = inlined_call_operand.vmem [shape: f32[2,16,16,128], index: 9, kind: output, shape index: {}]  }
   0x1 LB: > { %s5869_s10 = sadd.s32 4294967295, %s5810_s30   ;;  %p4213_p0 = scmp.ge.s32.totalorder %s5810_s30, 1  ;;  %s5810_s30 = sphi %s5863_s30, %s19_s30  }
   0x2   : > { %p287_p1 = scmp.lt.s32.totalorder %s5810_s30, 3 }
   0x4   : > { %p288_p2 = pnand %p4213_p0, %p287_p1 }
   0x6   : > { %291 = sbr.rel (%p288_p2) target bundleno = 1266 (0x4f2), region = 56 }
   0xd   : > { %v5692_v0 = vld [vmem:[%s6891_s1] sm:$0xff]   ;;  %p323_p3 = scmp.lt.s32.totalorder %s5869_s10, 1  ;;  %v5693_v1 = vld [vmem:[%s6891_s1 + $0x8] sm:$0xff]   ;;  %v5694_v2 = vld [vmem:[%s6891_s1 + $0x10] sm:$0xff]   ;;  %p4243_p4 = scmp.ne.s32.totalorder %s5869_s10, 0 }
   0xe   : > { %4755 = vmatprep.subr.bf16.mxu0 %v5692_v0  ;;  %v5695_v3 = vld [vmem:[%s6891_s1 + $0x18] sm:$0xff]   ;;  %v5696_v5 = vld [vmem:[%s6891_s1 + $0x20] sm:$0xff]   ;;  %v5697_v6 = vld [vmem:[%s6891_s1 + $0x28] sm:$0xff]  }
   0xf   : > { %s324_s15 = scalar_select %p323_p3, %s5869_s10, 1  ;;  %4756 = vmatpush3.bf16.msra.mxu0 %v5692_v0  ;;  %v5698_v7 = vld [vmem:[%s6891_s1 + $0x30] sm:$0xff]   ;;  %v5699_v8 = vld [vmem:[%s6891_s1 + $0x38] sm:$0xff]   ;;  %v5976_v24 = vld [vmem:[%s6892_s2] ss:$0 sm:$0xff] }
  0x10   : > { %4757 = vmatprep.subr.bf16.mxu0 %v5693_v1 }
  0x11   : > { %s4465_s18 = sshll.u32 %s324_s15, 7  ;;  %s4466_s22 = sshll.u32 %s324_s15, 8 }
  0x12   : > { %s5887_s21 = scalar_lea.vmem %s6890_s0, %s4465_s18  ;;  %s5892_s25 = scalar_lea.vmem %s6899_s9, %s4466_s22 }
  0x13   : > { %4758 = vmatpush3.bf16.msra.mxu0 %v5693_v1  ;;  %v5898_v4 = vld [vmem:[%s5887_s21] sm:$0xff]   ;;  %v5914_v9 = vld [vmem:[%s5887_s21 + $0x8] sm:$0xff]   ;;  %v5917_v10 = vld [vmem:[%s5887_s21 + $0x10] sm:$0xff]  }
  0x14   : > { %4759 = vmatprep.subr.bf16.mxu0 %v5694_v2  ;;  %4771 = vmatprep.mubr.bf16.mxu0 %v5898_v4  ;;  %v5922_v11 = vld [vmem:[%s5887_s21 + $0x18] sm:$0xff]   ;;  %v5925_v12 = vld [vmem:[%s5887_s21 + $0x20] sm:$0xff]   ;;  %v5930_v13 = vld [vmem:[%s5887_s21 + $0x28] sm:$0xff]  }
  0x15   : > { %v5933_v14 = vld [vmem:[%s5887_s21 + $0x30] sm:$0xff]   ;;  %v5938_v15 = vld [vmem:[%s5887_s21 + $0x38] sm:$0xff]   ;;  %v5941_v16 = vld [vmem:[%s5887_s21 + $0x40] sm:$0xff]  }
  0x16   : > { %v5946_v17 = vld [vmem:[%s5887_s21 + $0x48] sm:$0xff]   ;;  %v5949_v18 = vld [vmem:[%s5887_s21 + $0x50] sm:$0xff]   ;;  %v5954_v19 = vld [vmem:[%s5887_s21 + $0x58] sm:$0xff]  }
  0x17   : > { %4760 = vmatpush3.bf16.msra.mxu0 %v5694_v2  ;;  %6917 = vst [vmem:[#allocation3_spill] sm:$0xff] %v5954_v19  ;;  %v5957_v20 = vld [vmem:[%s5887_s21 + $0x60] sm:$0xff]   ;;  %v5962_v21 = vld [vmem:[%s5887_s21 + $0x68] sm:$0xff]   ;;  %v5965_v22 = vld [vmem:[%s5887_s21 + $0x70] sm:$0xff]  }
  0x18   : > { %4761 = vmatprep.subr.bf16.mxu0 %v5695_v3  ;;  %6918 = vst [vmem:[#allocation4_spill] sm:$0xff] %v5957_v20  ;;  %6919 = vst [vmem:[#allocation5_spill] sm:$0xff] %v5962_v21  ;;  %v5970_v23 = vld [vmem:[%s5887_s21 + $0x78] sm:$0xff]  }
  0x19   : > { %6920 = vst [vmem:[#allocation6_spill] sm:$0xff] %v5965_v22  ;;  %6921 = vst [vmem:[#allocation7_spill] sm:$0xff] %v5970_v23 }
  0x1b   : > { %4762 = vmatpush3.bf16.msra.mxu0 %v5695_v3 }
  0x1c   : > { %4763 = vmatprep.subr.bf16.mxu0 %v5696_v5 }
  0x1f   : > { %4764 = vmatpush3.bf16.msra.mxu0 %v5696_v5 }
  0x20   : > { %4765 = vmatprep.subr.bf16.mxu0 %v5697_v6 }
  0x23   : > { %4766 = vmatpush3.bf16.msra.mxu0 %v5697_v6 }
  0x24   : > { %4767 = vmatprep.subr.bf16.mxu0 %v5698_v7 }
  0x27   : > { %4768 = vmatpush3.bf16.msra.mxu0 %v5698_v7 }
  0x28   : > { %4769 = vmatprep.subr.bf16.mxu0 %v5699_v8 }
  0x2b   : > { %4770 = vmatpush3.bf16.msra.mxu0 %v5699_v8 }
  0x2e   : > { %4772 = vmatmul.mubr.bf16.vlgmr.msra.gmra.mrb[0].mxu0 %v5914_v9 }
  0x2f   : > { %4775 = vmatprep.mubr.bf16.mxu0 %v5917_v10 }
  0x36   : > { %4776 = vmatmul.mubr.bf16.gmra.mrb[4].mxu0 %v5922_v11 }
  0x37   : > { %4779 = vmatprep.mubr.bf16.mxu0 %v5925_v12 }
  0x3e   : > { %4780 = vmatmul.mubr.bf16.gmra.mrb[8].mxu0 %v5930_v13 }
  0x3f   : > { %4783 = vmatprep.mubr.bf16.mxu0 %v5933_v14 }
  0x46   : > { %4784 = vmatmul.mubr.bf16.gmra.mrb[12].mxu0 %v5938_v15 }
  0x47   : > { %4787 = vmatprep.mubr.bf16.mxu0 %v5941_v16 }
  0x4e   : > { %4788 = vmatmul.mubr.bf16.gmra.mrb[16].mxu0 %v5946_v17 }
  0x4f   : > { %4791 = vmatprep.mubr.bf16.mxu0 %v5949_v18 }
  0x56   : > { %4792 = vmatmul.mubr.bf16.gmra.mrb[20].mxu0 %v5954_v19 }
  0x57   : > { %4795 = vmatprep.mubr.bf16.mxu0 %v5957_v20 }
  0x5e   : > { %4796 = vmatmul.mubr.bf16.gmra.mrb[24].mxu0 %v5962_v21 }
  0x5f   : > { %4799 = vmatprep.mubr.bf16.mxu0 %v5965_v22 }
  0x66   : > { %4800 = vmatmul.mubr.bf16.gmra.mrb[28].mxu0 %v5970_v23 }
 0x101   : > { %v4773_v25 = vpop.f32.mrb[0].mxu0 }
 0x102   : > { %v5979_v26 = vadd.f32 %v4773_v25, %v5976_v24  ;;  %v567_v27 = vpop.f32.mrb[1].mxu0 }
 0x103   : > { %v5982_v28 = vadd.f32 %v5976_v24, %v567_v27  ;;  %v4774_v29 = vpop.f32.mrb[2].mxu0 }
 0x104   : > { %v6909_v30 = vmax.f32 %v5979_v26, 0.0  ;;  %v5986_v31 = vadd.f32 %v4774_v29, %v5976_v24  ;;  %v570_v32 = vpop.f32.mrb[3].mxu0 }
 0x105   : > { %v6911_v33 = vmax.f32 %v5982_v28, 0.0  ;;  %v5990_v34 = vadd.f32 %v5976_v24, %v570_v32 }
 0x106   : > { %v6908_v35 = vmax.f32 %v5986_v31, 0.0 }
 0x107   : > { %v6910_v36 = vmax.f32 %v5990_v34, 0.0 }
 0x109   : > { %v4777_v37 = vpop.f32.mrb[4].mxu0 }
 0x10a   : > { %v5995_v38 = vadd.f32 %v4777_v37, %v5976_v24  ;;  %v583_v39 = vpop.f32.mrb[5].mxu0 }
 0x10b   : > { %v5998_v40 = vadd.f32 %v5976_v24, %v583_v39  ;;  %v4778_v41 = vpop.f32.mrb[6].mxu0 }
 0x10c   : > { %v6902_v42 = vmax.f32 %v5995_v38, 0.0  ;;  %v6002_v43 = vadd.f32 %v4778_v41, %v5976_v24  ;;  %v586_v44 = vpop.f32.mrb[7].mxu0 }
 0x10d   : > { %v6900_v45 = vmax.f32 %v5998_v40, 0.0  ;;  %v6006_v46 = vadd.f32 %v5976_v24, %v586_v44 }
 0x10e   : > { %v6903_v47 = vmax.f32 %v6002_v43, 0.0 }
 0x10f   : > { %v6901_v48 = vmax.f32 %v6006_v46, 0.0 }
 0x111   : > { %v4781_v49 = vpop.f32.mrb[8].mxu0 }
 0x112   : > { %v6011_v50 = vadd.f32 %v4781_v49, %v5976_v24  ;;  %v599_v51 = vpop.f32.mrb[9].mxu0 }
 0x113   : > { %v6014_v52 = vadd.f32 %v5976_v24, %v599_v51  ;;  %v4782_v53 = vpop.f32.mrb[10].mxu0 }
 0x114   : > { %v6018_v55 = vadd.f32 %v4782_v53, %v5976_v24  ;;  %v602_v56 = vpop.f32.mrb[11].mxu0 }
 0x115   : > { %v6022_v58 = vadd.f32 %v5976_v24, %v602_v56 }
 0x119   : > { %v4785_v61 = vpop.f32.mrb[12].mxu0 }
 0x11a   : > { %v6027_v62 = vadd.f32 %v4785_v61, %v5976_v24  ;;  %v615_v63 = vpop.f32.mrb[13].mxu0 }
 0x11b   : > { %v6030_v0 = vadd.f32 %v5976_v24, %v615_v63  ;;  %v4786_v1 = vpop.f32.mrb[14].mxu0 }
 0x11c   : > { %v6034_v3 = vadd.f32 %v4786_v1, %v5976_v24  ;;  %v618_v5 = vpop.f32.mrb[15].mxu0 }
 0x11d   : > { %v6038_v7 = vadd.f32 %v5976_v24, %v618_v5 }
 0x121   : > { %v4789_v27 = vpop.f32.mrb[16].mxu0 }
 0x122   : > { %v6043_v29 = vadd.f32 %v4789_v27, %v5976_v24  ;;  %v631_v32 = vpop.f32.mrb[17].mxu0 }
 0x123   : > { %v6046_v37 = vadd.f32 %v5976_v24, %v631_v32  ;;  %v4790_v39 = vpop.f32.mrb[18].mxu0 }
 0x124   : > { %v6050_v44 = vadd.f32 %v4790_v39, %v5976_v24  ;;  %v634_v49 = vpop.f32.mrb[19].mxu0 }
 0x125   : > { %v6054_v53 = vadd.f32 %v5976_v24, %v634_v49 }
 0x129   : > { %v4793_v63 = vpop.f32.mrb[20].mxu0 }
 0x12a   : > { %v6059_v1 = vadd.f32 %v4793_v63, %v5976_v24  ;;  %v647_v5 = vpop.f32.mrb[21].mxu0 }
 0x12b   : > { %v6062_v27 = vadd.f32 %v5976_v24, %v647_v5  ;;  %v4794_v32 = vpop.f32.mrb[22].mxu0 }
 0x12c   : > { %v6066_v41 = vadd.f32 %v4794_v32, %v5976_v24  ;;  %v650_v49 = vpop.f32.mrb[23].mxu0 }
 0x12d   : > { %v6070_v56 = vadd.f32 %v5976_v24, %v650_v49 }
 0x131   : > { %v4797_v8 = vpop.f32.mrb[24].mxu0 }
 0x132   : > { %v6075_v5 = vadd.f32 %v4797_v8, %v5976_v24  ;;  %v663_v2 = vpop.f32.mrb[25].mxu0 }
 0x133   : > { %v6078_v39 = vadd.f32 %v5976_v24, %v663_v2  ;;  %v4798_v32 = vpop.f32.mrb[26].mxu0 }
 0x134   : > { %v6082_v51 = vadd.f32 %v4798_v32, %v5976_v24  ;;  %v666_v49 = vpop.f32.mrb[27].mxu0 }
 0x135   : > { %v6086_v61 = vadd.f32 %v5976_v24, %v666_v49 }
 0x139   : > { %v4801_v59 = vpop.f32.mrb[28].mxu0  ;;  %729 = sbr.rel (%p4243_p4) target bundleno = 343 (0x157), region = 60 }
 0x13a   : > { %v6091_v2 = vadd.f32 %v4801_v59, %v5976_v24  ;;  %v679_v54 = vpop.f32.mrb[29].mxu0 }
 0x13b   : > { %v6094_v25 = vadd.f32 %v5976_v24, %v679_v54  ;;  %v4802_v32 = vpop.f32.mrb[30].mxu0  ;;  %v5812_v54 = vmov (!%p4243_p4), 0.0  }
 0x13c   : > { %v6905_v60 = vmax.f32 %v6091_v2, 0.0  ;;  %v6098_v6 = vadd.f32 %v4802_v32, %v5976_v24  ;;  %v682_v49 = vpop.f32.mrb[31].mxu0  ;;  %730 = vst [vmem:[#allocation2] sm:$0xff] (!%p4243_p4), %v5812_v54  ;;  %731 = vst [vmem:[#allocation2 + $0x8] sm:$0xff] (!%p4243_p4), %v5812_v54 }
 0x13d   : > { %v6907_v57 = vmax.f32 %v6094_v25, 0.0  ;;  %v6102_v63 = vadd.f32 %v5976_v24, %v682_v49  ;;  %732 = vst [vmem:[#allocation2 + $0x10] sm:$0x3] (!%p4243_p4), %v5812_v54  ;;  %733 = vst [vmem:[#allocation2 + $0x18] sm:$0xff] (!%p4243_p4), %v5812_v54 }
 0x13e   : > { %v6904_v8 = vmax.f32 %v6098_v6, 0.0  ;;  %734 = vst [vmem:[#allocation2 + $0x20] sm:$0xff] (!%p4243_p4), %v5812_v54  ;;  %735 = vst [vmem:[#allocation2 + $0x28] sm:$0x3] (!%p4243_p4), %v5812_v54 }
 0x13f   : > { %v6906_v59 = vmax.f32 %v6102_v63, 0.0  ;;  %736 = vst [vmem:[#allocation2 + $0x30] sm:$0xff] (!%p4243_p4), %v5812_v54  ;;  %737 = vst [vmem:[#allocation2 + $0x38] sm:$0xff] (!%p4243_p4), %v5812_v54 }
 0x140   : > { %738 = vst [vmem:[#allocation2 + $0x40] sm:$0x3] %v5812_v54  ;;  %739 = vst [vmem:[#allocation2 + $0x48] sm:$0xff] %v5812_v54 }
 0x141   : > { %740 = vst [vmem:[#allocation2 + $0x50] sm:$0xff] %v5812_v54  ;;  %741 = vst [vmem:[#allocation2 + $0x58] sm:$0x3] %v5812_v54 }
 0x142   : > { %742 = vst [vmem:[#allocation2 + $0x60] sm:$0xff] %v5812_v54  ;;  %743 = vst [vmem:[#allocation2 + $0x68] sm:$0xff] %v5812_v54 }
 0x143   : > { %744 = vst [vmem:[#allocation2 + $0x70] sm:$0x3] %v5812_v54  ;;  %745 = vst [vmem:[#allocation2 + $0x78] sm:$0xff] %v5812_v54 }
 0x144   : > { %746 = vst [vmem:[#allocation2 + $0x80] sm:$0xff] %v5812_v54  ;;  %747 = vst [vmem:[#allocation2 + $0x88] sm:$0x3] %v5812_v54 }
 0x145   : > { %748 = vst [vmem:[#allocation2 + $0x90] sm:$0xff] %v5812_v54  ;;  %749 = vst [vmem:[#allocation2 + $0x98] sm:$0xff] %v5812_v54 }
 0x146   : > { %750 = vst [vmem:[#allocation2 + $0xa0] sm:$0x3] %v5812_v54  ;;  %751 = vst [vmem:[#allocation2 + $0xa8] sm:$0xff] %v5812_v54 }
 0x147   : > { %752 = vst [vmem:[#allocation2 + $0xb0] sm:$0xff] %v5812_v54  ;;  %753 = vst [vmem:[#allocation2 + $0xb8] sm:$0x3] %v5812_v54 }
 0x148   : > { %754 = vst [vmem:[#allocation2 + $0xc0] sm:$0xff] %v5812_v54  ;;  %755 = vst [vmem:[#allocation2 + $0xc8] sm:$0xff] %v5812_v54 }
 0x149   : > { %756 = vst [vmem:[#allocation2 + $0xd0] sm:$0x3] %v5812_v54  ;;  %757 = vst [vmem:[#allocation2 + $0xd8] sm:$0xff] %v5812_v54 }
 0x14a   : > { %758 = vst [vmem:[#allocation2 + $0xe0] sm:$0xff] %v5812_v54  ;;  %759 = vst [vmem:[#allocation2 + $0xe8] sm:$0x3] %v5812_v54 }
 0x14b   : > { %760 = vst [vmem:[#allocation2 + $0xf0] sm:$0xff] %v5812_v54  ;;  %761 = vst [vmem:[#allocation2 + $0xf8] sm:$0xff] %v5812_v54 }
 0x14c   : > { %762 = vst [vmem:[#allocation2 + $0x100] sm:$0x3] %v5812_v54  ;;  %763 = vst [vmem:[#allocation2 + $0x108] sm:$0xff] %v5812_v54 }
 0x14d   : > { %764 = vst [vmem:[#allocation2 + $0x110] sm:$0xff] %v5812_v54  ;;  %765 = vst [vmem:[#allocation2 + $0x118] sm:$0x3] %v5812_v54 }
 0x14e   : > { %766 = vst [vmem:[#allocation2 + $0x120] sm:$0xff] %v5812_v54  ;;  %767 = vst [vmem:[#allocation2 + $0x128] sm:$0xff] %v5812_v54 }
 0x14f   : > { %768 = vst [vmem:[#allocation2 + $0x130] sm:$0x3] %v5812_v54  ;;  %769 = vst [vmem:[#allocation2 + $0x138] sm:$0xff] %v5812_v54 }
 0x150   : > { %770 = vst [vmem:[#allocation2 + $0x140] sm:$0xff] %v5812_v54  ;;  %771 = vst [vmem:[#allocation2 + $0x148] sm:$0x3] %v5812_v54 }
 0x151   : > { %772 = vst [vmem:[#allocation2 + $0x150] sm:$0xff] %v5812_v54  ;;  %773 = vst [vmem:[#allocation2 + $0x158] sm:$0xff] %v5812_v54 }
 0x152   : > { %774 = vst [vmem:[#allocation2 + $0x160] sm:$0x3] %v5812_v54  ;;  %775 = vst [vmem:[#allocation2 + $0x168] sm:$0xff] %v5812_v54 }
 0x153   : > { %776 = vst [vmem:[#allocation2 + $0x170] sm:$0xff] %v5812_v54  ;;  %777 = vst [vmem:[#allocation2 + $0x178] sm:$0x3] %v5812_v54 }
 0x154   : > { %778 = vst [vmem:[#allocation2 + $0x180] sm:$0xff] %v5812_v54  ;;  %779 = vst [vmem:[#allocation2 + $0x188] sm:$0xff] %v5812_v54 }
 0x155   : > { %780 = vst [vmem:[#allocation2 + $0x190] sm:$0x3] %v5812_v54  ;;  %781 = vst [vmem:[#allocation2 + $0x198] sm:$0xff] %v5812_v54 }
 0x156   : > { %782 = vst [vmem:[#allocation2 + $0x1a0] sm:$0xff] %v5812_v54  ;;  %783 = vst [vmem:[#allocation2 + $0x1a8] sm:$0x3] %v5812_v54 }
 0x157 PF: > { %v5716_v24 = vld [vmem:[%s6893_s3 + $0xc0] sm:$0xff]   ;;  %785 = vst [vmem:[#allocation2 + $0x19] sm:$0xff] %v6911_v33  ;;  %786 = vst [vmem:[#allocation2 + $0x21] sm:$0xff] %v6910_v36  ;;  %v6922_v32 = vmax.f32 %v6014_v52, 0.0  ;;  %v6923_v49 = vmax.f32 %v6022_v58, 0.0  ;;  %v6924_v54 = vmax.f32 %v6011_v50, 0.0 }
 0x158   : > { %787 = vst [vmem:[#allocation2 + $0x31] sm:$0xff] %v6909_v30  ;;  %788 = vst [vmem:[#allocation2 + $0x39] sm:$0xff] %v6908_v35  ;;  %4947 = vmatprep.subr.bf16.mxu1 %v5716_v24  ;;  %v5737_v23 = vld [vmem:[%s6893_s3 + $0x70] sm:$0xff]   ;;  %v5727_v22 = vld [vmem:[%s6893_s3 + $0x118] sm:$0xff]  }
 0x159   : > { %789 = vst [vmem:[#allocation2 + $0x49] sm:$0xff] %v6900_v45  ;;  %790 = vst [vmem:[#allocation2 + $0x51] sm:$0xff] %v6901_v48  ;;  %v6925_v45 = vmax.f32 %v6018_v55, 0.0  ;;  %v6926_v48 = vmax.f32 %v6030_v0, 0.0  ;;  %4948 = vmatpush3.bf16.msra.mxu1 %v5716_v24  ;;  %v5720_v24 = vld [vmem:[%s6893_s3 + $0xe0] sm:$0xff]  }
 0x15a   : > { %791 = vst [vmem:[#allocation2 + $0x61] sm:$0xff] %v6902_v42  ;;  %792 = vst [vmem:[#allocation2 + $0x69] sm:$0xff] %v6903_v47  ;;  %v6927_v42 = vmax.f32 %v6038_v7, 0.0  ;;  %v6928_v47 = vmax.f32 %v6027_v62, 0.0 }
 0x15b   : > { %793 = vst [vmem:[#allocation2 + $0x79] sm:$0xff] %v6922_v32  ;;  %794 = vst [vmem:[#allocation2 + $0x81] sm:$0xff] %v6923_v49  ;;  %v6929_v32 = vmax.f32 %v6034_v3, 0.0  ;;  %v6930_v49 = vmax.f32 %v6046_v37, 0.0 }
 0x15c   : > { %795 = vst [vmem:[#allocation2 + $0x91] sm:$0xff] %v6924_v54  ;;  %796 = vst [vmem:[#allocation2 + $0x99] sm:$0xff] %v6925_v45  ;;  %v6931_v54 = vmax.f32 %v6054_v53, 0.0  ;;  %v6932_v45 = vmax.f32 %v6043_v29, 0.0 }
 0x15d   : > { %797 = vst [vmem:[#allocation2 + $0xa9] sm:$0xff] %v6926_v48  ;;  %798 = vst [vmem:[#allocation2 + $0xb1] sm:$0xff] %v6927_v42  ;;  %v6933_v48 = vmax.f32 %v6050_v44, 0.0  ;;  %v6934_v42 = vmax.f32 %v6062_v27, 0.0 }
 0x15e   : > { %799 = vst [vmem:[#allocation2 + $0xc1] sm:$0xff] %v6928_v47  ;;  %800 = vst [vmem:[#allocation2 + $0xc9] sm:$0xff] %v6929_v32  ;;  %v6935_v47 = vmax.f32 %v6070_v56, 0.0  ;;  %v6936_v32 = vmax.f32 %v6059_v1, 0.0 }
 0x15f   : > { %801 = vst [vmem:[#allocation2 + $0xd9] sm:$0xff] %v6930_v49  ;;  %802 = vst [vmem:[#allocation2 + $0xe1] sm:$0xff] %v6931_v54  ;;  %v6937_v49 = vmax.f32 %v6066_v41, 0.0  ;;  %v6938_v54 = vmax.f32 %v6078_v39, 0.0 }
 0x160   : > { %803 = vst [vmem:[#allocation2 + $0xf1] sm:$0xff] %v6932_v45  ;;  %804 = vst [vmem:[#allocation2 + $0xf9] sm:$0xff] %v6933_v48  ;;  %v6939_v45 = vmax.f32 %v6086_v61, 0.0  ;;  %v6940_v48 = vmax.f32 %v6075_v5, 0.0 }
 0x161   : > { %805 = vst [vmem:[#allocation2 + $0x109] sm:$0xff] %v6934_v42  ;;  %806 = vst [vmem:[#allocation2 + $0x111] sm:$0xff] %v6935_v47  ;;  %v6941_v42 = vmax.f32 %v6082_v51, 0.0  ;;  %v5717_v47 = vld [vmem:[%s6893_s3 + $0xc8] sm:$0xff]   ;;  %v1676_v30 = vld [vmem:[#allocation2 + $0x60] sm:$0xff] }
 0x162   : > { %807 = vst [vmem:[#allocation2 + $0x121] sm:$0xff] %v6936_v32  ;;  %808 = vst [vmem:[#allocation2 + $0x129] sm:$0xff] %v6937_v49  ;;  %4949 = vmatprep.subr.bf16.mxu1 %v5717_v47  ;;  %v5718_v32 = vld [vmem:[%s6893_s3 + $0xd0] sm:$0xff]   ;;  %v5719_v49 = vld [vmem:[%s6893_s3 + $0xd8] sm:$0xff]  }
 0x163   : > { %809 = vst [vmem:[#allocation2 + $0x139] sm:$0xff] %v6938_v54  ;;  %810 = vst [vmem:[#allocation2 + $0x141] sm:$0xff] %v6939_v45  ;;  %4950 = vmatpush3.bf16.msra.mxu1 %v5717_v47  ;;  %v1670_v54 = vld [vmem:[#allocation2 + $0x18] sm:$0xff]  ;;  %v1671_v45 = vld [vmem:[#allocation2 + $0x20] sm:$0xff] }
 0x164   : > { %811 = vst [vmem:[#allocation2 + $0x151] sm:$0xff] %v6940_v48  ;;  %812 = vst [vmem:[#allocation2 + $0x159] sm:$0xff] %v6941_v42  ;;  %4951 = vmatprep.subr.bf16.mxu1 %v5718_v32  ;;  %v6183_v48 = vpack.c.bf16 %v1671_v45, %v1670_v54  ;;  %v5721_v42 = vld [vmem:[%s6893_s3 + $0xe8] sm:$0xff]   ;;  %v5728_v47 = vld [vmem:[%s6893_s3 + $0x40] sm:$0xff]  }
 0x165   : > { %813 = vst [vmem:[#allocation2 + $0x169] sm:$0xff] %v6907_v57  ;;  %814 = vst [vmem:[#allocation2 + $0x171] sm:$0xff] %v6906_v59  ;;  %4803 = vmatprep.subr.bf16.mxu0 %v5728_v47  ;;  %v5731_v54 = vld [vmem:[%s6893_s3 + $0x50] sm:$0xff]   ;;  %v5723_v45 = vld [vmem:[%s6893_s3 + $0xf8] sm:$0xff]  }
 0x166   : > { %815 = vst [vmem:[#allocation2 + $0x181] sm:$0xff] %v6905_v60  ;;  %816 = vst [vmem:[#allocation2 + $0x189] sm:$0xff] %v6904_v8  ;;  %4963 = vmatprep.mubr.bf16.mxu1 %v6183_v48  ;;  %4804 = vmatpush3.bf16.msra.mxu0 %v5728_v47  ;;  %v5733_v47 = vld [vmem:[%s6893_s3 + $0x58] sm:$0xff]   ;;  %v5724_v60 = vld [vmem:[%s6893_s3 + $0x100] sm:$0xff]  }
 0x167   : > { %4952 = vmatpush3.bf16.msra.mxu1 %v5718_v32  ;;  %v5722_v32 = vld [vmem:[%s6893_s3 + $0xf0] sm:$0xff]   ;;  %v1673_v8 = vld [vmem:[#allocation2 + $0x38] sm:$0xff]  ;;  %v1677_v36 = vld [vmem:[#allocation2 + $0x68] sm:$0xff] }
 0x168   : > { %4953 = vmatprep.subr.bf16.mxu1 %v5719_v49  ;;  %v1675_v59 = vld [vmem:[#allocation2 + $0x50] sm:$0xff]  ;;  %v6231_v33 = vpack.c.bf16 %v1677_v36, %v1676_v30  ;;  %v1681_v20 = vld [vmem:[#allocation2 + $0x98] sm:$0xff]  ;;  %v1682_v30 = vld [vmem:[#allocation2 + $0xa8] sm:$0xff] }
 0x169   : > { %v1680_v21 = vld [vmem:[#allocation2 + $0x90] sm:$0xff]  ;;  %v5739_v36 = vld [vmem:[%s6893_s3 + $0x78] sm:$0xff]  }
 0x16b   : > { %4954 = vmatpush3.bf16.msra.mxu1 %v5719_v49  ;;  %v5730_v49 = vld [vmem:[%s6893_s3 + $0x48] sm:$0xff]  }
 0x16c   : > { %4955 = vmatprep.subr.bf16.mxu1 %v5720_v24  ;;  %4805 = vmatprep.subr.bf16.mxu0 %v5730_v49 }
 0x16d   : > { %4806 = vmatpush3.bf16.msra.mxu0 %v5730_v49  ;;  %v5734_v49 = vld [vmem:[%s6893_s3 + $0x60] sm:$0xff]  }
 0x16e   : > { %4807 = vmatprep.subr.bf16.mxu0 %v5731_v54 }
 0x16f   : > { %4956 = vmatpush3.bf16.msra.mxu1 %v5720_v24  ;;  %v1672_v24 = vld [vmem:[#allocation2 + $0x30] sm:$0xff] }
 0x170   : > { %4957 = vmatprep.subr.bf16.mxu1 %v5721_v42  ;;  %v6213_v57 = vpack.c.bf16 %v1673_v8, %v1672_v24  ;;  %v1678_v8 = vld [vmem:[#allocation2 + $0x78] sm:$0xff]  ;;  %v5736_v24 = vld [vmem:[%s6893_s3 + $0x68] sm:$0xff]  }
 0x171   : > { %4808 = vmatpush3.bf16.msra.mxu0 %v5731_v54  ;;  %v1679_v54 = vld [vmem:[#allocation2 + $0x80] sm:$0xff] }
 0x172   : > { %4809 = vmatprep.subr.bf16.mxu0 %v5733_v47 }
 0x173   : > { %4958 = vmatpush3.bf16.msra.mxu1 %v5721_v42  ;;  %v1674_v42 = vld [vmem:[#allocation2 + $0x48] sm:$0xff] }
 0x174   : > { %4959 = vmatprep.subr.bf16.mxu1 %v5722_v32  ;;  %v6218_v35 = vpack.c.bf16 %v1675_v59, %v1674_v42  ;;  %v882_v59 = vld [vmem:[#allocation2 + $0x9] sm:$0xff] }
 0x175   : > { %4810 = vmatpush3.bf16.msra.mxu0 %v5733_v47  ;;  %v5726_v42 = vld [vmem:[%s6893_s3 + $0x110] sm:$0xff]  }
 0x176   : > { %4811 = vmatprep.subr.bf16.mxu0 %v5734_v49 }
 0x177   : > { %4960 = vmatpush3.bf16.msra.mxu1 %v5722_v32  ;;  %v5725_v32 = vld [vmem:[%s6893_s3 + $0x108] sm:$0xff]  }
 0x178   : > { %4961 = vmatprep.subr.bf16.mxu1 %v5723_v45 }
 0x179   : > { %4812 = vmatpush3.bf16.msra.mxu0 %v5734_v49  ;;  %v1683_v49 = vld [vmem:[#allocation2 + $0xb0] sm:$0xff] }
 0x17a   : > { %4813 = vmatprep.subr.bf16.mxu0 %v5736_v24 }
 0x17b   : > { %4962 = vmatpush3.bf16.msra.mxu1 %v5723_v45  ;;  %v881_v45 = vld [vmem:[#allocation2 + $0x1] sm:$0xff] }
 0x17c   : > { %4995 = vmatprep.subr.bf16.mxu1 %v5724_v60  ;;  %v913_v47 = vpack.c.bf16 %v882_v59, %v881_v45  ;;  %v5732_v45 = vld [vmem:[%s6893_s3 + $0x128] sm:$0xff]   ;;  %v6942_v59 = vmax.f32 %v5982_v28, 0.0  ;;  %v1684_v28 = vld [vmem:[#allocation2 + $0xc0] sm:$0xff] }
 0x17d   : > { %4814 = vmatpush3.bf16.msra.mxu0 %v5736_v24  ;;  %v6254_v24 = vpack.c.bf16 %v1683_v49, %v1682_v30  ;;  %v1686_v30 = vld [vmem:[#allocation2 + $0xd8] sm:$0xff]  ;;  %v5747_v49 = vld [vmem:[%s6893_s3 + $0x10] sm:$0xff]  }
 0x17e   : > { %4964 = vmatmul.mubr.bf16.vlgmr.msra.gmra.mrb[0].mxu1 %v6213_v57  ;;  %4819 = vmatprep.mubr.bf16.mxu0 %v913_v47 }
 0x17f   : > { %4996 = vmatpush3.bf16.msra.mxu1 %v5724_v60  ;;  %4967 = vmatprep.mubr.bf16.mxu1 %v6218_v35  ;;  %v6236_v60 = vpack.c.bf16 %v1679_v54, %v1678_v8  ;;  %v6249_v8 = vpack.c.bf16 %v1681_v20, %v1680_v21  ;;  %v5744_v54 = vld [vmem:[%s6893_s3] sm:$0xff]   ;;  %v6944_v20 = vmax.f32 %v5979_v26, 0.0  ;;  %v6945_v21 = vmax.f32 %v5986_v31, 0.0  ;;  %v5735_v26 = vld [vmem:[%s6893_s3 + $0x130] sm:$0xff]  }
 0x180   : > { %4997 = vmatprep.subr.bf16.mxu1 %v5725_v32  ;;  %4815 = vmatprep.subr.bf16.mxu0 %v5737_v23 }
 0x181   : > { %4816 = vmatpush3.bf16.msra.mxu0 %v5737_v23  ;;  %v6269_v47 = vpack.c.bf16 %v6945_v21, %v6944_v20  ;;  %v6947_v20 = vmax.f32 %v6006_v46, 0.0  ;;  %v1688_v21 = vld [vmem:[#allocation2 + $0xf0] sm:$0xff]  ;;  %v1690_v46 = vld [vmem:[#allocation2 + $0x108] sm:$0xff] }
 0x182   : > { %4817 = vmatprep.subr.bf16.mxu0 %v5739_v36 }
 0x183   : > { %4998 = vmatpush3.bf16.msra.mxu1 %v5725_v32  ;;  %v5729_v32 = vld [vmem:[%s6893_s3 + $0x120] sm:$0xff]  }
 0x184   : > { %4999 = vmatprep.subr.bf16.mxu1 %v5726_v42 }
 0x185   : > { %4818 = vmatpush3.bf16.msra.mxu0 %v5739_v36  ;;  %v1687_v36 = vld [vmem:[#allocation2 + $0xe0] sm:$0xff] }
 0x186   : > { %4968 = vmatmul.mubr.bf16.gmra.mrb[4].mxu1 %v6231_v33  ;;  %4851 = vmatprep.subr.bf16.mxu0 %v5744_v54 }
 0x187   : > { %4971 = vmatprep.mubr.bf16.mxu1 %v6236_v60  ;;  %5000 = vmatpush3.bf16.msra.mxu1 %v5726_v42  ;;  %v6943_v42 = vmax.f32 %v5990_v34, 0.0  ;;  %v1685_v34 = vld [vmem:[#allocation2 + $0xc8] sm:$0xff] }
 0x188   : > { %5001 = vmatprep.subr.bf16.mxu1 %v5727_v22  ;;  %v6281_v31 = vpack.c.bf16 %v1685_v34, %v1684_v28  ;;  %v6948_v28 = vmax.f32 %v5995_v38, 0.0  ;;  %v6949_v34 = vmax.f32 %v6002_v43, 0.0  ;;  %v6311_v38 = vld [vmem:[%s6893_s3 + $0x140] sm:$0xff]  }
 0x189   : > { %v6263_v23 = vpack.c.bf16 %v6943_v42, %v6942_v59  ;;  %v5738_v59 = vld [vmem:[%s6893_s3 + $0x138] sm:$0xff]   ;;  %v6946_v42 = vmax.f32 %v5998_v40, 0.0 }
 0x18a   : > { %v6301_v19 = vpack.c.bf16 %v6949_v34, %v6948_v28  ;;  %v1689_v40 = vld [vmem:[#allocation2 + $0xf8] sm:$0xff]  ;;  %v1692_v34 = vld [vmem:[#allocation2 + $0x120] sm:$0xff] }
 0x18b   : > { %5002 = vmatpush3.bf16.msra.mxu1 %v5727_v22  ;;  %v5746_v22 = vld [vmem:[%s6893_s3 + $0x8] sm:$0xff]   ;;  %4820 = vmatmul.mubr.bf16.vlgmr.msra.gmra.mrb[32].mxu0 %v6263_v23  ;;  %v6315_v43 = vpack.c.bf16 %v1689_v40, %v1688_v21  ;;  %v6953_v21 = vmax.f32 %v6018_v55, 0.0  ;;  %v1695_v40 = vld [vmem:[#allocation2 + $0x140] sm:$0xff] }
 0x18c   : > { %5003 = vmatprep.subr.bf16.mxu1 %v5729_v32  ;;  %4823 = vmatprep.mubr.bf16.mxu0 %v6269_v47 }
 0x18d   : > { %4852 = vmatpush3.bf16.msra.mxu0 %v5744_v54  ;;  %v6295_v54 = vpack.c.bf16 %v6947_v20, %v6946_v42  ;;  %v6951_v42 = vmax.f32 %v6022_v58, 0.0  ;;  %v1694_v58 = vld [vmem:[#allocation2 + $0x138] sm:$0xff] }
 0x18e   : > { %4972 = vmatmul.mubr.bf16.gmra.mrb[8].mxu1 %v6249_v8  ;;  %4853 = vmatprep.subr.bf16.mxu0 %v5746_v22 }
 0x18f   : > { %4975 = vmatprep.mubr.bf16.mxu1 %v6254_v24  ;;  %5004 = vmatpush3.bf16.msra.mxu1 %v5729_v32  ;;  %v6286_v32 = vpack.c.bf16 %v1687_v36, %v1686_v30  ;;  %v1691_v30 = vld [vmem:[#allocation2 + $0x110] sm:$0xff] }
 0x190   : > { %5005 = vmatprep.subr.bf16.mxu1 %v5732_v45  ;;  %v6320_v36 = vpack.c.bf16 %v1691_v30, %v1690_v46  ;;  %v6954_v46 = vmax.f32 %v6030_v0, 0.0  ;;  %v6955_v30 = vmax.f32 %v6038_v7, 0.0  ;;  %v1697_v0 = vld [vmem:[#allocation2 + $0x158] sm:$0xff]  ;;  %v1698_v7 = vld [vmem:[#allocation2 + $0x168] sm:$0xff] }
 0x191   : > { %4854 = vmatpush3.bf16.msra.mxu0 %v5746_v22  ;;  %v5750_v22 = vld [vmem:[%s6893_s3 + $0x20] sm:$0xff]  }
 0x192   : > { %4855 = vmatprep.subr.bf16.mxu0 %v5747_v49 }
 0x193   : > { %5006 = vmatpush3.bf16.msra.mxu1 %v5732_v45  ;;  %v5749_v45 = vld [vmem:[%s6893_s3 + $0x18] sm:$0xff]   ;;  %4824 = vmatmul.mubr.bf16.gmra.mrb[36].mxu0 %v6295_v54 }
 0x194   : > { %5007 = vmatprep.subr.bf16.mxu1 %v5735_v26  ;;  %4827 = vmatprep.mubr.bf16.mxu0 %v6301_v19 }
 0x195   : > { %4856 = vmatpush3.bf16.msra.mxu0 %v5747_v49  ;;  %v6952_v49 = vmax.f32 %v6011_v50, 0.0  ;;  %v5753_v50 = vld [vmem:[%s6893_s3 + $0x30] sm:$0xff]  }
 0x196   : > { %4976 = vmatmul.mubr.bf16.gmra.mrb[12].mxu1 %v6281_v31  ;;  %4857 = vmatprep.subr.bf16.mxu0 %v5749_v45 }
 0x197   : > { %4979 = vmatprep.mubr.bf16.mxu1 %v6286_v32  ;;  %5008 = vmatpush3.bf16.msra.mxu1 %v5735_v26  ;;  %v6950_v26 = vmax.f32 %v6014_v52, 0.0  ;;  %v6333_v28 = vpack.c.bf16 %v6953_v21, %v6952_v49  ;;  %v1693_v52 = vld [vmem:[#allocation2 + $0x128] sm:$0xff]  ;;  %v6957_v49 = vmax.f32 %v6034_v3, 0.0 }
 0x198   : > { %5009 = vmatprep.subr.bf16.mxu1 %v5738_v59  ;;  %v6345_v55 = vpack.c.bf16 %v1693_v52, %v1692_v34  ;;  %v5755_v34 = vld [vmem:[%s6893_s3 + $0x38] sm:$0xff]   ;;  %v1699_v52 = vld [vmem:[#allocation2 + $0x170] sm:$0xff] }
 0x199   : > { %v6327_v20 = vpack.c.bf16 %v6951_v42, %v6950_v26  ;;  %4858 = vmatpush3.bf16.msra.mxu0 %v5749_v45  ;;  %v6347_v45 = vpack.c.bf16 %v1695_v40, %v1694_v58  ;;  %v6353_v26 = vpack.c.bf16 %v6955_v30, %v6954_v46  ;;  %v6956_v42 = vmax.f32 %v6027_v62, 0.0  ;;  %v5760_v62 = vld [vmem:[%s6893_s3 + $0x80] sm:$0xff]  }
 0x19a   : > { %4859 = vmatprep.subr.bf16.mxu0 %v5750_v22  ;;  %v6958_v58 = vmax.f32 %v6046_v37, 0.0  ;;  %v6959_v40 = vmax.f32 %v6054_v53, 0.0  ;;  %v6960_v30 = vmax.f32 %v6043_v29, 0.0  ;;  %v6962_v53 = vmax.f32 %v6062_v27, 0.0  ;;  %v5741_v27 = vld [vmem:[%s6893_s3 + $0x148] sm:$0xff]  }
 0x19b   : > { %5010 = vmatpush3.bf16.msra.mxu1 %v5738_v59  ;;  %v5752_v59 = vld [vmem:[%s6893_s3 + $0x28] sm:$0xff]   ;;  %4828 = vmatmul.mubr.bf16.gmra.mrb[40].mxu0 %v6327_v20  ;;  %v6359_v21 = vpack.c.bf16 %v6957_v49, %v6956_v42  ;;  %v6961_v42 = vmax.f32 %v6050_v44, 0.0  ;;  %v6963_v29 = vmax.f32 %v6070_v56, 0.0  ;;  %v6964_v44 = vmax.f32 %v6059_v1, 0.0 }
 0x19c   : > { %5043 = vmatprep.subr.bf16.mxu1 %v6311_v38  ;;  %4831 = vmatprep.mubr.bf16.mxu0 %v6333_v28  ;;  %v922_v46 = vpack.c.bf16 %v6959_v40, %v6958_v58  ;;  %v6966_v56 = vmax.f32 %v6078_v39, 0.0  ;;  %v6969_v58 = vmax.f32 %v6082_v51, 0.0  ;;  %v5742_v39 = vld [vmem:[%s6893_s3 + $0x150] sm:$0xff]   ;;  %v5743_v51 = vld [vmem:[%s6893_s3 + $0x158] sm:$0xff]  }
 0x19d   : > { %4860 = vmatpush3.bf16.msra.mxu0 %v5750_v22  ;;  %v1696_v22 = vld [vmem:[#allocation2 + $0x150] sm:$0xff]  ;;  %v6383_v49 = vpack.c.bf16 %v6961_v42, %v6960_v30  ;;  %v5745_v30 = vld [vmem:[%s6893_s3 + $0x160] sm:$0xff]  }
 0x19e   : > { %4980 = vmatmul.mubr.bf16.gmra.mrb[16].mxu1 %v6315_v43  ;;  %4861 = vmatprep.subr.bf16.mxu0 %v5752_v59  ;;  %v6371_v3 = vpack.c.bf16 %v1697_v0, %v1696_v22  ;;  %v1701_v22 = vld [vmem:[#allocation2 + $0x188] sm:$0xff]  ;;  %v6392_v0 = vpack.c.bf16 %v6963_v29, %v6962_v53  ;;  %v2290_v53 = vld [vmem:[#allocation2 + $0x7a] sm:$0xff] }
 0x19f   : > { %4983 = vmatprep.mubr.bf16.mxu1 %v6320_v36 }
 0x1a1   : > { %4862 = vmatpush3.bf16.msra.mxu0 %v5752_v59  ;;  %v6373_v59 = vpack.c.bf16 %v1699_v52, %v1698_v7  ;;  %v6967_v52 = vmax.f32 %v6086_v61, 0.0  ;;  %v817_v61 = vld [vmem:[#allocation2] sm:$0xff] }
 0x1a2   : > { %4863 = vmatprep.subr.bf16.mxu0 %v5753_v50 }
 0x1a3   : > { %4832 = vmatmul.mubr.bf16.gmra.mrb[44].mxu0 %v6353_v26  ;;  %v6410_v1 = vpack.c.bf16 %v6967_v52, %v6966_v56  ;;  %v2293_v56 = vld [vmem:[#allocation2 + $0x9a] sm:$0xff]  ;;  %v2295_v52 = vld [vmem:[#allocation2 + $0xb2] sm:$0xff] }
 0x1a4   : > { %4835 = vmatprep.mubr.bf16.mxu0 %v6359_v21 }
 0x1a5   : > { %4864 = vmatpush3.bf16.msra.mxu0 %v5753_v50  ;;  %v1700_v50 = vld [vmem:[#allocation2 + $0x180] sm:$0xff] }
 0x1a6   : > { %4984 = vmatmul.mubr.bf16.gmra.mrb[20].mxu1 %v6345_v55  ;;  %4865 = vmatprep.subr.bf16.mxu0 %v5755_v34  ;;  %v1717_v37 = vpack.c.bf16 %v1701_v22, %v1700_v50  ;;  %v2286_v50 = vld [vmem:[#allocation2 + $0x4a] sm:$0xff]  ;;  %v2287_v22 = vld [vmem:[#allocation2 + $0x52] sm:$0xff] }
 0x1a7   : > { %4987 = vmatprep.mubr.bf16.mxu1 %v6347_v45 }
 0x1a9   : > { %4866 = vmatpush3.bf16.msra.mxu0 %v5755_v34  ;;  %v6965_v34 = vmax.f32 %v6066_v41, 0.0  ;;  %v6968_v41 = vmax.f32 %v6075_v5, 0.0  ;;  %v6970_v5 = vmax.f32 %v6094_v25, 0.0  ;;  %v5748_v25 = vld [vmem:[%s6893_s3 + $0x168] sm:$0xff]  }
 0x1aa   : > { %4899 = vmatprep.subr.bf16.mxu0 %v5760_v62 }
 0x1ab   : > { %4836 = vmatmul.mubr.bf16.gmra.mrb[48].mxu0 %v922_v46  ;;  %v6398_v7 = vpack.c.bf16 %v6965_v34, %v6964_v44  ;;  %v6416_v40 = vpack.c.bf16 %v6969_v58, %v6968_v41  ;;  %v1365_v44 = vld [vmem:[#allocation2 + $0xa] sm:$0xff] }
 0x1ac   : > { %4839 = vmatprep.mubr.bf16.mxu0 %v6383_v49 }
 0x1ae   : > { %4988 = vmatmul.mubr.bf16.gmra.mrb[24].mxu1 %v6371_v3 }
 0x1af   : > { %4991 = vmatprep.mubr.bf16.mxu1 %v6373_v59 }
 0x1b3   : > { %4840 = vmatmul.mubr.bf16.gmra.mrb[52].mxu0 %v6392_v0 }
 0x1b4   : > { %4843 = vmatprep.mubr.bf16.mxu0 %v6398_v7 }
 0x1b6   : > { %4992 = vmatmul.mubr.bf16.gmra.mrb[28].mxu1 %v1717_v37 }
 0x1b7   : > { %5011 = vmatprep.mubr.bf16.mxu1 %v6263_v23  ;;  %v818_v23 = vld [vmem:[#allocation2 + $0x8] sm:$0xff] }
 0x1bb   : > { %4844 = vmatmul.mubr.bf16.gmra.mrb[56].mxu0 %v6410_v1 }
 0x1bc   : > { %4847 = vmatprep.mubr.bf16.mxu0 %v6416_v40 }
 0x1be   : > { %5012 = vmatmul.mubr.bf16.vlgmr.msra.gmra.mrb[0].mxu1 %v6269_v47  ;;  %v6971_v47 = vmax.f32 %v6102_v63, 0.0  ;;  %v5751_v63 = vld [vmem:[%s6893_s3 + $0x170] sm:$0xff]  }
 0x1bf   : > { %5044 = vmatpush3.bf16.msra.mxu1 %v6311_v38  ;;  %5015 = vmatprep.mubr.bf16.mxu1 %v6295_v54  ;;  %v849_v38 = vpack.c.bf16 %v818_v23, %v817_v61  ;;  %v2297_v61 = vld [vmem:[#allocation2 + $0xca] sm:$0xff]  ;;  %v2298_v23 = vld [vmem:[#allocation2 + $0xda] sm:$0xff] }
 0x1c0   : > { %5045 = vmatprep.subr.bf16.mxu1 %v5741_v27  ;;  %v928_v54 = vpack.c.bf16 %v6971_v47, %v6970_v5 }
 0x1c3   : > { %5046 = vmatpush3.bf16.msra.mxu1 %v5741_v27  ;;  %4848 = vmatmul.mubr.bf16.gmra.mrb[60].mxu0 %v928_v54 }
 0x1c4   : > { %5047 = vmatprep.subr.bf16.mxu1 %v5742_v39  ;;  %4867 = vmatprep.mubr.bf16.mxu0 %v849_v38  ;;  %v2300_v38 = vld [vmem:[#allocation2 + $0xf2] sm:$0xff] }
 0x1c6   : > { %5016 = vmatmul.mubr.bf16.gmra.mrb[4].mxu1 %v6301_v19  ;;  %v5762_v19 = vld [vmem:[%s6893_s3 + $0x88] sm:$0xff]  }
 0x1c7   : > { %5019 = vmatprep.mubr.bf16.mxu1 %v6327_v20  ;;  %5048 = vmatpush3.bf16.msra.mxu1 %v5742_v39  ;;  %v5763_v20 = vld [vmem:[%s6893_s3 + $0x90] sm:$0xff]   ;;  %v2296_v39 = vld [vmem:[#allocation2 + $0xc2] sm:$0xff] }
 0x1c8   : > { %5049 = vmatprep.subr.bf16.mxu1 %v5743_v51  ;;  %v6535_v5 = vpack.c.bf16 %v2297_v61, %v2296_v39  ;;  %v5775_v39 = vld [vmem:[%s6893_s3 + $0x1d8] sm:$0xff]   ;;  %v2599_v61 = vld [vmem:[#allocation2 + $0xa8] sm:$0xff] }
 0x1cb   : > { %5050 = vmatpush3.bf16.msra.mxu1 %v5743_v51  ;;  %4868 = vmatmul.mubr.bf16.vlgmr.msra.gmra.mrb[32].mxu0 %v6183_v48  ;;  %v5756_v48 = vld [vmem:[%s6893_s3 + $0x180] sm:$0xff]   ;;  %v5767_v51 = vld [vmem:[%s6893_s3 + $0x1b0] sm:$0xff]  }
 0x1cc   : > { %5051 = vmatprep.subr.bf16.mxu1 %v5745_v30  ;;  %4871 = vmatprep.mubr.bf16.mxu0 %v6213_v57  ;;  %v5765_v57 = vld [vmem:[%s6893_s3 + $0x98] sm:$0xff]  }
 0x1cd   : > { %4900 = vmatpush3.bf16.msra.mxu0 %v5760_v62  ;;  %v6972_v62 = vmax.f32 %v6091_v2, 0.0  ;;  %v2288_v2 = vld [vmem:[#allocation2 + $0x62] sm:$0xff] }
 0x1ce   : > { %5020 = vmatmul.mubr.bf16.gmra.mrb[8].mxu1 %v6333_v28  ;;  %4901 = vmatprep.subr.bf16.mxu0 %v5762_v19  ;;  %v5754_v28 = vld [vmem:[%s6893_s3 + $0x178] sm:$0xff]  }
 0x1cf   : > { %5023 = vmatprep.mubr.bf16.mxu1 %v6353_v26  ;;  %5052 = vmatpush3.bf16.msra.mxu1 %v5745_v30  ;;  %v5766_v26 = vld [vmem:[%s6893_s3 + $0xa0] sm:$0xff]  }
 0x1d0   : > { %5053 = vmatprep.subr.bf16.mxu1 %v5748_v25  ;;  %v2301_v30 = vld [vmem:[#allocation2 + $0xfa] sm:$0xff] }
 0x1d1   : > { %4902 = vmatpush3.bf16.msra.mxu0 %v5762_v19  ;;  %v2303_v19 = vld [vmem:[#allocation2 + $0x112] sm:$0xff] }
 0x1d2   : > { %4903 = vmatprep.subr.bf16.mxu0 %v5763_v20 }
 0x1d3   : > { %5054 = vmatpush3.bf16.msra.mxu1 %v5748_v25  ;;  %4872 = vmatmul.mubr.bf16.gmra.mrb[36].mxu0 %v6218_v35  ;;  %v5771_v35 = vld [vmem:[%s6893_s3 + $0xb8] sm:$0xff]   ;;  %v2302_v25 = vld [vmem:[#allocation2 + $0x10a] sm:$0xff] }
 0x1d4   : > { %5055 = vmatprep.subr.bf16.mxu1 %v5751_v63  ;;  %4875 = vmatprep.mubr.bf16.mxu0 %v6231_v33  ;;  %v5769_v33 = vld [vmem:[%s6893_s3 + $0xb0] sm:$0xff]  }
 0x1d5   : > { %4904 = vmatpush3.bf16.msra.mxu0 %v5763_v20  ;;  %v6549_v20 = vpack.c.bf16 %v2301_v30, %v2300_v38 }
 0x1d6   : > { %5024 = vmatmul.mubr.bf16.gmra.mrb[12].mxu1 %v6359_v21  ;;  %4905 = vmatprep.subr.bf16.mxu0 %v5765_v57  ;;  %v5768_v21 = vld [vmem:[%s6893_s3 + $0xa8] sm:$0xff]  }
 0x1d7   : > { %5027 = vmatprep.mubr.bf16.mxu1 %v922_v46  ;;  %5056 = vmatpush3.bf16.msra.mxu1 %v5751_v63  ;;  %v6973_v46 = vmax.f32 %v6098_v6, 0.0  ;;  %v5757_v6 = vld [vmem:[%s6893_s3 + $0x188] sm:$0xff]   ;;  %v5772_v63 = vld [vmem:[%s6893_s3 + $0x1c0] sm:$0xff]  }
 0x1d8   : > { %5057 = vmatprep.subr.bf16.mxu1 %v5754_v28 }
 0x1d9   : > { %4906 = vmatpush3.bf16.msra.mxu0 %v5765_v57  ;;  %v2023_v42 = vpack.c.bf16 %v6973_v46, %v6972_v62  ;;  %v2304_v57 = vld [vmem:[#allocation2 + $0x122] sm:$0xff]  ;;  %v2310_v62 = vld [vmem:[#allocation2 + $0x16a] sm:$0xff]  ;;  %v2311_v46 = vld [vmem:[#allocation2 + $0x172] sm:$0xff] }
 0x1da   : > { %4907 = vmatprep.subr.bf16.mxu0 %v5766_v26 }
 0x1db   : > { %5058 = vmatpush3.bf16.msra.mxu1 %v5754_v28  ;;  %4876 = vmatmul.mubr.bf16.gmra.mrb[40].mxu0 %v6236_v60  ;;  %v2282_v60 = vld [vmem:[#allocation2 + $0x1a] sm:$0xff]  ;;  %v6551_v28 = vpack.c.bf16 %v2303_v19, %v2302_v25  ;;  %v5777_v25 = vld [vmem:[%s6893_s3 + $0x1e8] sm:$0xff]  }
 0x1dc   : > { %5091 = vmatprep.subr.bf16.mxu1 %v5756_v48  ;;  %4879 = vmatprep.mubr.bf16.mxu0 %v6249_v8  ;;  %v2283_v8 = vld [vmem:[#allocation2 + $0x22] sm:$0xff]  ;;  %v2603_v19 = vld [vmem:[#allocation2 + $0xd8] sm:$0xff] }
 0x1dd   : > { %4908 = vmatpush3.bf16.msra.mxu0 %v5766_v26  ;;  %v2306_v26 = vld [vmem:[#allocation2 + $0x13a] sm:$0xff] }
 0x1de   : > { %5028 = vmatmul.mubr.bf16.gmra.mrb[16].mxu1 %v6383_v49  ;;  %4909 = vmatprep.subr.bf16.mxu0 %v5768_v21  ;;  %v2285_v49 = vld [vmem:[#allocation2 + $0x3a] sm:$0xff] }
 0x1df   : > { %5031 = vmatprep.mubr.bf16.mxu1 %v6392_v0  ;;  %v1364_v0 = vld [vmem:[#allocation2 + $0x2] sm:$0xff] }
 0x1e0   : > { %v1396_v27 = vpack.c.bf16 %v1365_v44, %v1364_v0 }
 0x1e1   : > { %4910 = vmatpush3.bf16.msra.mxu0 %v5768_v21  ;;  %v2307_v21 = vld [vmem:[#allocation2 + $0x142] sm:$0xff] }
 0x1e2   : > { %4911 = vmatprep.subr.bf16.mxu0 %v5769_v33 }
 0x1e3   : > { %4880 = vmatmul.mubr.bf16.gmra.mrb[44].mxu0 %v6254_v24  ;;  %v2314_v24 = vpack.c.bf16 %v2283_v8, %v2282_v60  ;;  %v2308_v60 = vld [vmem:[#allocation2 + $0x152] sm:$0xff]  ;;  %v2309_v8 = vld [vmem:[#allocation2 + $0x15a] sm:$0xff] }
 0x1e4   : > { %4883 = vmatprep.mubr.bf16.mxu0 %v6281_v31  ;;  %v2284_v31 = vld [vmem:[#allocation2 + $0x32] sm:$0xff] }
 0x1e5   : > { %4912 = vmatpush3.bf16.msra.mxu0 %v5769_v33  ;;  %v6495_v37 = vpack.c.bf16 %v2285_v49, %v2284_v31  ;;  %v2312_v31 = vld [vmem:[#allocation2 + $0x182] sm:$0xff]  ;;  %v2313_v49 = vld [vmem:[#allocation2 + $0x18a] sm:$0xff] }
 0x1e6   : > { %5032 = vmatmul.mubr.bf16.gmra.mrb[20].mxu1 %v6398_v7  ;;  %4913 = vmatprep.subr.bf16.mxu0 %v5771_v35  ;;  %v5759_v7 = vld [vmem:[%s6893_s3 + $0x198] sm:$0xff]  }
 0x1e7   : > { %5035 = vmatprep.mubr.bf16.mxu1 %v6410_v1  ;;  %v5761_v1 = vld [vmem:[%s6893_s3 + $0x1a0] sm:$0xff]  }
 0x1e9   : > { %4914 = vmatpush3.bf16.msra.mxu0 %v5771_v35  ;;  %v6559_v35 = vpack.c.bf16 %v2307_v21, %v2306_v26  ;;  %v5778_v26 = vld [vmem:[%s6893_s3 + $0x1f0] sm:$0xff]  }
 0x1eb   : > { %4884 = vmatmul.mubr.bf16.gmra.mrb[48].mxu0 %v6286_v32  ;;  %v6497_v32 = vpack.c.bf16 %v2287_v22, %v2286_v50  ;;  %v2589_v50 = vld [vmem:[#allocation2 + $0x30] sm:$0xff]  ;;  %v2590_v22 = vld [vmem:[#allocation2 + $0x38] sm:$0xff] }
 0x1ec   : > { %4887 = vmatprep.mubr.bf16.mxu0 %v6315_v43  ;;  %v2289_v43 = vld [vmem:[#allocation2 + $0x6a] sm:$0xff] }
 0x1ed   : > { %v6509_v29 = vpack.c.bf16 %v2289_v43, %v2288_v2  ;;  %v2621_v2 = vpack.c.bf16 %v2590_v22, %v2589_v50  ;;  %v2591_v43 = vld [vmem:[#allocation2 + $0x48] sm:$0xff]  ;;  %v5780_v50 = vld [vmem:[%s6893_s3 + $0x200] sm:$0xff]  }
 0x1ee   : > { %5036 = vmatmul.mubr.bf16.gmra.mrb[24].mxu1 %v6416_v40  ;;  %v5764_v40 = vld [vmem:[%s6893_s3 + $0x1a8] sm:$0xff]  }
 0x1ef   : > { %5039 = vmatprep.mubr.bf16.mxu1 %v928_v54  ;;  %v5770_v54 = vld [vmem:[%s6893_s3 + $0x1b8] sm:$0xff]  }
 0x1f3   : > { %4888 = vmatmul.mubr.bf16.gmra.mrb[52].mxu0 %v6320_v36  ;;  %v2291_v36 = vld [vmem:[#allocation2 + $0x82] sm:$0xff] }
 0x1f4   : > { %4891 = vmatprep.mubr.bf16.mxu0 %v6345_v55  ;;  %v5758_v55 = vld [vmem:[%s6893_s3 + $0x190] sm:$0xff]   ;;  %v6511_v34 = vpack.c.bf16 %v2291_v36, %v2290_v53  ;;  %v2593_v36 = vld [vmem:[#allocation2 + $0x60] sm:$0xff] }
 0x1f5   : > { %v2592_v53 = vld [vmem:[#allocation2 + $0x50] sm:$0xff] }
 0x1f6   : > { %5040 = vmatmul.mubr.bf16.gmra.mrb[28].mxu1 %v2023_v42  ;;  %v6565_v42 = vpack.c.bf16 %v2309_v8, %v2308_v60  ;;  %v2622_v0 = vpack.c.bf16 %v2592_v53, %v2591_v43  ;;  %v5779_v8 = vld [vmem:[%s6893_s3 + $0x1f8] sm:$0xff]   ;;  %v2612_v53 = vld [vmem:[#allocation2 + $0x140] sm:$0xff] }
 0x1f7   : > { %5059 = vmatprep.mubr.bf16.mxu1 %v2314_v24  ;;  %v2611_v43 = vld [vmem:[#allocation2 + $0x138] sm:$0xff] }
 0x1fb   : > { %4892 = vmatmul.mubr.bf16.gmra.mrb[56].mxu0 %v6347_v45  ;;  %v2292_v45 = vld [vmem:[#allocation2 + $0x92] sm:$0xff] }
 0x1fc   : > { %4895 = vmatprep.mubr.bf16.mxu0 %v6371_v3  ;;  %v2294_v3 = vld [vmem:[#allocation2 + $0xaa] sm:$0xff]  ;;  %v6522_v41 = vpack.c.bf16 %v2293_v56, %v2292_v45  ;;  %v2596_v45 = vld [vmem:[#allocation2 + $0x80] sm:$0xff] }
 0x1fd   : > { %v6524_v58 = vpack.c.bf16 %v2295_v52, %v2294_v3  ;;  %v2597_v56 = vld [vmem:[#allocation2 + $0x90] sm:$0xff]  ;;  %v2598_v3 = vld [vmem:[#allocation2 + $0x98] sm:$0xff] }
 0x1fe   : > { %5060 = vmatmul.mubr.bf16.vlgmr.msra.gmra.mrb[0].mxu1 %v6495_v37  ;;  %v5774_v52 = vld [vmem:[%s6893_s3 + $0x1d0] sm:$0xff]  }
 0x1ff   : > { %5092 = vmatpush3.bf16.msra.mxu1 %v5756_v48  ;;  %5063 = vmatprep.mubr.bf16.mxu1 %v6497_v32  ;;  %v2305_v48 = vld [vmem:[#allocation2 + $0x12a] sm:$0xff] }
 0x200   : > { %5093 = vmatprep.subr.bf16.mxu1 %v5757_v6  ;;  %v6557_v33 = vpack.c.bf16 %v2305_v48, %v2304_v57  ;;  %v2605_v57 = vld [vmem:[#allocation2 + $0xf0] sm:$0xff]  ;;  %v2606_v48 = vld [vmem:[#allocation2 + $0xf8] sm:$0xff] }
 0x201   : > { %v2629_v60 = vpack.c.bf16 %v2606_v48, %v2605_v57  ;;  %v2901_v57 = vld [vmem:[#allocation2 + $0x79] sm:$0xff]  ;;  %v2902_v48 = vld [vmem:[#allocation2 + $0x81] sm:$0xff] }
 0x203   : > { %5094 = vmatpush3.bf16.msra.mxu1 %v5757_v6  ;;  %4896 = vmatmul.mubr.bf16.gmra.mrb[60].mxu0 %v6373_v59  ;;  %v2299_v59 = vld [vmem:[#allocation2 + $0xe2] sm:$0xff]  ;;  %v6573_v6 = vpack.c.bf16 %v2313_v49, %v2312_v31 }
 0x204   : > { %5095 = vmatprep.subr.bf16.mxu1 %v5758_v55  ;;  %4915 = vmatprep.mubr.bf16.mxu0 %v1396_v27  ;;  %v6537_v47 = vpack.c.bf16 %v2299_v59, %v2298_v23  ;;  %v2595_v27 = vld [vmem:[#allocation2 + $0x78] sm:$0xff]  ;;  %v2600_v23 = vld [vmem:[#allocation2 + $0xb0] sm:$0xff]  ;;  %v2601_v59 = vld [vmem:[#allocation2 + $0xc0] sm:$0xff] }
 0x205   : > { %v2626_v38 = vpack.c.bf16 %v2600_v23, %v2599_v61  ;;  %v2609_v31 = vld [vmem:[#allocation2 + $0x120] sm:$0xff]  ;;  %v2610_v49 = vld [vmem:[#allocation2 + $0x128] sm:$0xff] }
 0x206   : > { %5064 = vmatmul.mubr.bf16.gmra.mrb[4].mxu1 %v6509_v29  ;;  %v2896_v61 = vld [vmem:[#allocation2 + $0x39] sm:$0xff] }
 0x207   : > { %5067 = vmatprep.mubr.bf16.mxu1 %v6511_v34  ;;  %5096 = vmatpush3.bf16.msra.mxu1 %v5758_v55  ;;  %v2594_v55 = vld [vmem:[#allocation2 + $0x68] sm:$0xff] }
 0x208   : > { %5097 = vmatprep.subr.bf16.mxu1 %v5759_v7  ;;  %v2623_v44 = vpack.c.bf16 %v2594_v55, %v2593_v36  ;;  %v2613_v36 = vld [vmem:[#allocation2 + $0x150] sm:$0xff]  ;;  %v2614_v55 = vld [vmem:[#allocation2 + $0x158] sm:$0xff] }
 0x20b   : > { %5098 = vmatpush3.bf16.msra.mxu1 %v5759_v7  ;;  %4916 = vmatmul.mubr.bf16.vlgmr.msra.gmra.mrb[32].mxu0 %v2314_v24  ;;  %v6567_v24 = vpack.c.bf16 %v2311_v46, %v2310_v62  ;;  %v5773_v7 = vld [vmem:[%s6893_s3 + $0x1c8] sm:$0xff]   ;;  %v2608_v46 = vld [vmem:[#allocation2 + $0x110] sm:$0xff] }
 0x20c   : > { %5099 = vmatprep.subr.bf16.mxu1 %v5761_v1  ;;  %4919 = vmatprep.mubr.bf16.mxu0 %v6495_v37  ;;  %v2607_v62 = vld [vmem:[#allocation2 + $0x108] sm:$0xff] }
 0x20d   : > { %v2630_v22 = vpack.c.bf16 %v2608_v46, %v2607_v62  ;;  %v5783_v46 = vld [vmem:[%s6893_s3 + $0x218] sm:$0xff]  }
 0x20e   : > { %5068 = vmatmul.mubr.bf16.gmra.mrb[8].mxu1 %v6522_v41 }
 0x20f   : > { %5071 = vmatprep.mubr.bf16.mxu1 %v6524_v58  ;;  %5100 = vmatpush3.bf16.msra.mxu1 %v5761_v1  ;;  %v2624_v1 = vpack.c.bf16 %v2596_v45, %v2595_v27  ;;  %v2616_v27 = vld [vmem:[#allocation2 + $0x170] sm:$0xff]  ;;  %v2617_v45 = vld [vmem:[#allocation2 + $0x180] sm:$0xff] }
 0x210   : > { %5101 = vmatprep.subr.bf16.mxu1 %v5764_v40 }
 0x213   : > { %5102 = vmatpush3.bf16.msra.mxu1 %v5764_v40  ;;  %4920 = vmatmul.mubr.bf16.gmra.mrb[36].mxu0 %v6497_v32  ;;  %v2625_v40 = vpack.c.bf16 %v2598_v3, %v2597_v56  ;;  %v2618_v56 = vld [vmem:[#allocation2 + $0x188] sm:$0xff] }
 0x214   : > { %5103 = vmatprep.subr.bf16.mxu1 %v5767_v51  ;;  %4923 = vmatprep.mubr.bf16.mxu0 %v6509_v29 }
 0x216   : > { %5072 = vmatmul.mubr.bf16.gmra.mrb[12].mxu1 %v6535_v5 }
 0x217   : > { %5075 = vmatprep.mubr.bf16.mxu1 %v6537_v47  ;;  %5104 = vmatpush3.bf16.msra.mxu1 %v5767_v51  ;;  %v2602_v51 = vld [vmem:[#allocation2 + $0xc8] sm:$0xff] }
 0x218   : > { %5105 = vmatprep.subr.bf16.mxu1 %v5770_v54  ;;  %v2627_v30 = vpack.c.bf16 %v2602_v51, %v2601_v59  ;;  %v2897_v51 = vld [vmem:[#allocation2 + $0x49] sm:$0xff] }
 0x21b   : > { %5106 = vmatpush3.bf16.msra.mxu1 %v5770_v54  ;;  %4924 = vmatmul.mubr.bf16.gmra.mrb[40].mxu0 %v6511_v34  ;;  %v5776_v54 = vld [vmem:[%s6893_s3 + $0x1e0] sm:$0xff]  }
 0x21c   : > { %5139 = vmatprep.subr.bf16.mxu1 %v5772_v63  ;;  %4927 = vmatprep.mubr.bf16.mxu0 %v6522_v41 }
 0x21e   : > { %5076 = vmatmul.mubr.bf16.gmra.mrb[16].mxu1 %v6549_v20 }
 0x21f   : > { %5079 = vmatprep.mubr.bf16.mxu1 %v6551_v28 }
 0x223   : > { %4928 = vmatmul.mubr.bf16.gmra.mrb[44].mxu0 %v6524_v58 }
 0x224   : > { %4931 = vmatprep.mubr.bf16.mxu0 %v6535_v5 }
 0x226   : > { %5080 = vmatmul.mubr.bf16.gmra.mrb[20].mxu1 %v6557_v33 }
 0x227   : > { %5083 = vmatprep.mubr.bf16.mxu1 %v6559_v35 }
 0x22b   : > { %4932 = vmatmul.mubr.bf16.gmra.mrb[48].mxu0 %v6537_v47 }
 0x22c   : > { %4935 = vmatprep.mubr.bf16.mxu0 %v6549_v20 }
 0x22e   : > { %5084 = vmatmul.mubr.bf16.gmra.mrb[24].mxu1 %v6565_v42 }
 0x22f   : > { %5087 = vmatprep.mubr.bf16.mxu1 %v6567_v24 }
 0x233   : > { %4936 = vmatmul.mubr.bf16.gmra.mrb[52].mxu0 %v6551_v28 }
 0x234   : > { %4939 = vmatprep.mubr.bf16.mxu0 %v6557_v33 }
 0x236   : > { %5088 = vmatmul.mubr.bf16.gmra.mrb[28].mxu1 %v6573_v6 }
 0x237   : > { %5107 = vmatprep.mubr.bf16.mxu1 %v2621_v2  ;;  %v2631_v2 = vpack.c.bf16 %v2610_v49, %v2609_v31  ;;  %v2905_v31 = vld [vmem:[#allocation2 + $0xa9] sm:$0xff]  ;;  %v2906_v49 = vld [vmem:[#allocation2 + $0xb1] sm:$0xff] }
 0x23b   : > { %4940 = vmatmul.mubr.bf16.gmra.mrb[56].mxu0 %v6559_v35 }
 0x23c   : > { %4943 = vmatprep.mubr.bf16.mxu0 %v6565_v42 }
 0x23e   : > { %5108 = vmatmul.mubr.bf16.vlgmr.msra.gmra.mrb[0].mxu1 %v2622_v0  ;;  %v2632_v0 = vpack.c.bf16 %v2612_v53, %v2611_v43  ;;  %v2932_v43 = vpack.c.bf16 %v2906_v49, %v2905_v31  ;;  %v5793_v49 = vld [vmem:[%s6895_s5 + $0x28] sm:$0xff]  }
 0x23f   : > { %5140 = vmatpush3.bf16.msra.mxu1 %v5772_v63  ;;  %5111 = vmatprep.mubr.bf16.mxu1 %v2623_v44  ;;  %v2604_v63 = vld [vmem:[#allocation2 + $0xe0] sm:$0xff]  ;;  %v2633_v44 = vpack.c.bf16 %v2614_v55, %v2613_v36  ;;  %v5785_v36 = vld [vmem:[%s6893_s3 + $0x228] sm:$0xff]  }
 0x240   : > { %5141 = vmatprep.subr.bf16.mxu1 %v5773_v7  ;;  %v2628_v21 = vpack.c.bf16 %v2604_v63, %v2603_v19  ;;  %v5781_v63 = vld [vmem:[%s6893_s3 + $0x208] sm:$0xff]   ;;  %v2909_v55 = vld [vmem:[#allocation2 + $0xd9] sm:$0xff] }
 0x243   : > { %5142 = vmatpush3.bf16.msra.mxu1 %v5773_v7  ;;  %4944 = vmatmul.mubr.bf16.gmra.mrb[60].mxu0 %v6567_v24  ;;  %v2615_v7 = vld [vmem:[#allocation2 + $0x168] sm:$0xff] }
 0x244   : > { %5143 = vmatprep.subr.bf16.mxu1 %v5774_v52  ;;  %v2634_v3 = vpack.c.bf16 %v2616_v27, %v2615_v7  ;;  %v2912_v7 = vld [vmem:[#allocation2 + $0xf9] sm:$0xff]  ;;  %v5786_v27 = vld [vmem:[%s6893_s3 + $0x230] sm:$0xff]  }
 0x246   : > { %5112 = vmatmul.mubr.bf16.gmra.mrb[4].mxu1 %v2624_v1  ;;  %v2619_v1 = vld [vmem:[#allocation2 + $0x198] sm:$0xff] }
 0x247   : > { %5115 = vmatprep.mubr.bf16.mxu1 %v2625_v40  ;;  %5144 = vmatpush3.bf16.msra.mxu1 %v5774_v52  ;;  %v2635_v52 = vpack.c.bf16 %v2618_v56, %v2617_v45  ;;  %v2620_v40 = vld [vmem:[#allocation2 + $0x1a0] sm:$0xff] }
 0x248   : > { %5145 = vmatprep.subr.bf16.mxu1 %v5775_v39  ;;  %v2636_v23 = vpack.c.bf16 %v2620_v40, %v2619_v1  ;;  %v2914_v1 = vld [vmem:[#allocation2 + $0x111] sm:$0xff]  ;;  %v2915_v40 = vld [vmem:[#allocation2 + $0x121] sm:$0xff] }
 0x24b   : > { %5146 = vmatpush3.bf16.msra.mxu1 %v5775_v39  ;;  %v2895_v39 = vld [vmem:[#allocation2 + $0x31] sm:$0xff] }
 0x24c   : > { %5147 = vmatprep.subr.bf16.mxu1 %v5776_v54  ;;  %v2927_v59 = vpack.c.bf16 %v2896_v61, %v2895_v39  ;;  %v2916_v39 = vld [vmem:[#allocation2 + $0x129] sm:$0xff] }
 0x24e   : > { %5116 = vmatmul.mubr.bf16.gmra.mrb[8].mxu1 %v2626_v38  ;;  %v2899_v38 = vld [vmem:[#allocation2 + $0x61] sm:$0xff] }
 0x24f   : > { %5119 = vmatprep.mubr.bf16.mxu1 %v2627_v30  ;;  %5148 = vmatpush3.bf16.msra.mxu1 %v5776_v54  ;;  %v2898_v54 = vld [vmem:[#allocation2 + $0x51] sm:$0xff]  ;;  %v2900_v30 = vld [vmem:[#allocation2 + $0x69] sm:$0xff] }
 0x250   : > { %5149 = vmatprep.subr.bf16.mxu1 %v5777_v25  ;;  %v2929_v19 = vpack.c.bf16 %v2900_v30, %v2899_v38  ;;  %v2918_v38 = vld [vmem:[#allocation2 + $0x141] sm:$0xff]  ;;  %v2919_v30 = vld [vmem:[#allocation2 + $0x151] sm:$0xff] }
 0x253   : > { %5150 = vmatpush3.bf16.msra.mxu1 %v5777_v25  ;;  %v2928_v25 = vpack.c.bf16 %v2898_v54, %v2897_v51  ;;  %v5789_v51 = vld [vmem:[%s6895_s5 + $0x8] sm:$0xff]   ;;  %v2917_v54 = vld [vmem:[#allocation2 + $0x139] sm:$0xff] }
 0x254   : > { %5151 = vmatprep.subr.bf16.mxu1 %v5778_v26 }
 0x256   : > { %5120 = vmatmul.mubr.bf16.gmra.mrb[12].mxu1 %v2628_v21  ;;  %v2904_v21 = vld [vmem:[#allocation2 + $0x99] sm:$0xff] }
 0x257   : > { %5123 = vmatprep.mubr.bf16.mxu1 %v2629_v60  ;;  %5152 = vmatpush3.bf16.msra.mxu1 %v5778_v26  ;;  %v2903_v26 = vld [vmem:[#allocation2 + $0x91] sm:$0xff] }
 0x258   : > { %5153 = vmatprep.subr.bf16.mxu1 %v5779_v8  ;;  %v5782_v60 = vld [vmem:[%s6893_s3 + $0x210] sm:$0xff]   ;;  %v2931_v62 = vpack.c.bf16 %v2904_v21, %v2903_v26 }
 0x259   : > { %v2921_v26 = vld [vmem:[#allocation2 + $0x169] sm:$0xff]  ;;  %v2922_v21 = vld [vmem:[#allocation2 + $0x171] sm:$0xff] }
 0x25b   : > { %5154 = vmatpush3.bf16.msra.mxu1 %v5779_v8  ;;  %v2930_v8 = vpack.c.bf16 %v2902_v48, %v2901_v57  ;;  %v5791_v48 = vld [vmem:[%s6895_s5 + $0x18] sm:$0xff]  }
 0x25c   : > { %5187 = vmatprep.subr.bf16.mxu1 %v5780_v50 }
 0x25e   : > { %5124 = vmatmul.mubr.bf16.gmra.mrb[16].mxu1 %v2630_v22  ;;  %v2908_v22 = vld [vmem:[#allocation2 + $0xc9] sm:$0xff] }
 0x25f   : > { %5127 = vmatprep.mubr.bf16.mxu1 %v2631_v2  ;;  %v5784_v2 = vld [vmem:[%s6893_s3 + $0x220] sm:$0xff]  }
 0x266   : > { %5128 = vmatmul.mubr.bf16.gmra.mrb[20].mxu1 %v2632_v0  ;;  %v2910_v0 = vld [vmem:[#allocation2 + $0xe1] sm:$0xff] }
 0x267   : > { %5131 = vmatprep.mubr.bf16.mxu1 %v2633_v44  ;;  %v2911_v44 = vld [vmem:[#allocation2 + $0xf1] sm:$0xff]  ;;  %v2934_v45 = vpack.c.bf16 %v2910_v0, %v2909_v55 }
 0x268   : > { %v2935_v56 = vpack.c.bf16 %v2912_v7, %v2911_v44 }
 0x26e   : > { %5132 = vmatmul.mubr.bf16.gmra.mrb[24].mxu1 %v2634_v3  ;;  %v5787_v3 = vld [vmem:[%s6893_s3 + $0x238] sm:$0xff]  }
 0x26f   : > { %5135 = vmatprep.mubr.bf16.mxu1 %v2635_v52  ;;  %v2913_v52 = vld [vmem:[#allocation2 + $0x109] sm:$0xff] }
 0x270   : > { %v2936_v61 = vpack.c.bf16 %v2914_v1, %v2913_v52 }
 0x276   : > { %5136 = vmatmul.mubr.bf16.gmra.mrb[28].mxu1 %v2636_v23  ;;  %v2937_v23 = vpack.c.bf16 %v2916_v39, %v2915_v40 }
 0x277   : > { %5155 = vmatprep.mubr.bf16.mxu1 %v2927_v59  ;;  %v5788_v59 = vld [vmem:[%s6895_s5] sm:$0xff]  }
 0x278   : > { %5235 = vmatprep.subr.bf16.mxu0 %v5788_v59 }
 0x279   : > { %5236 = vmatpush3.bf16.msra.mxu0 %v5788_v59  ;;  %v5795_v59 = vld [vmem:[%s6895_s5 + $0x38] sm:$0xff]  }
 0x27a   : > { %5237 = vmatprep.subr.bf16.mxu0 %v5789_v51 }
 0x27d   : > { %5238 = vmatpush3.bf16.msra.mxu0 %v5789_v51 }
 0x27e   : > { %5156 = vmatmul.mubr.bf16.vlgmr.msra.gmra.mrb[0].mxu1 %v2928_v25  ;;  %v2920_v25 = vld [vmem:[#allocation2 + $0x159] sm:$0xff] }
 0x27f   : > { %5188 = vmatpush3.bf16.msra.mxu1 %v5780_v50  ;;  %5159 = vmatprep.mubr.bf16.mxu1 %v2929_v19  ;;  %v2907_v50 = vld [vmem:[#allocation2 + $0xc1] sm:$0xff]  ;;  %v2938_v19 = vpack.c.bf16 %v2918_v38, %v2917_v54  ;;  %v2939_v57 = vpack.c.bf16 %v2920_v25, %v2919_v30 }
 0x280   : > { %5189 = vmatprep.subr.bf16.mxu1 %v5781_v63  ;;  %v2933_v53 = vpack.c.bf16 %v2908_v22, %v2907_v50  ;;  %v2925_v50 = vld [vmem:[#allocation2 + $0x199] sm:$0xff]  ;;  %v2926_v22 = vld [vmem:[#allocation2 + $0x1a1] sm:$0xff] }
 0x281   : > { %v5796_v25 = vld [vmem:[%s6897_s7] sm:$0xff]  }
 0x283   : > { %5190 = vmatpush3.bf16.msra.mxu1 %v5781_v63  ;;  %v5790_v63 = vld [vmem:[%s6895_s5 + $0x10] sm:$0xff]  }
 0x284   : > { %5191 = vmatprep.subr.bf16.mxu1 %v5782_v60  ;;  %5239 = vmatprep.subr.bf16.mxu0 %v5790_v63 }
 0x285   : > { %5240 = vmatpush3.bf16.msra.mxu0 %v5790_v63  ;;  %v6721_v63 = vld [vmem:[%s6894_s4] ss:$0 sm:$0xff] }
 0x286   : > { %5160 = vmatmul.mubr.bf16.gmra.mrb[4].mxu1 %v2930_v8  ;;  %v2924_v8 = vld [vmem:[#allocation2 + $0x189] sm:$0xff]  ;;  %5241 = vmatprep.subr.bf16.mxu0 %v5791_v48 }
 0x287   : > { %5163 = vmatprep.mubr.bf16.mxu1 %v2931_v62  ;;  %5192 = vmatpush3.bf16.msra.mxu1 %v5782_v60  ;;  %v2923_v60 = vld [vmem:[#allocation2 + $0x181] sm:$0xff]  ;;  %v2940_v62 = vpack.c.bf16 %v2922_v21, %v2921_v26 }
 0x288   : > { %5193 = vmatprep.subr.bf16.mxu1 %v5783_v46  ;;  %v2941_v31 = vpack.c.bf16 %v2924_v8, %v2923_v60 }
 0x289   : > { %5242 = vmatpush3.bf16.msra.mxu0 %v5791_v48 }
 0x28b   : > { %5194 = vmatpush3.bf16.msra.mxu1 %v5783_v46  ;;  %v5792_v46 = vld [vmem:[%s6895_s5 + $0x20] sm:$0xff]  }
 0x28c   : > { %5195 = vmatprep.subr.bf16.mxu1 %v5784_v2  ;;  %5243 = vmatprep.subr.bf16.mxu0 %v5792_v46 }
 0x28d   : > { %5244 = vmatpush3.bf16.msra.mxu0 %v5792_v46 }
 0x28e   : > { %5164 = vmatmul.mubr.bf16.gmra.mrb[8].mxu1 %v2932_v43  ;;  %5245 = vmatprep.subr.bf16.mxu0 %v5793_v49  ;;  %v5794_v43 = vld [vmem:[%s6895_s5 + $0x30] sm:$0xff]  }
 0x28f   : > { %5167 = vmatprep.mubr.bf16.mxu1 %v2933_v53  ;;  %5196 = vmatpush3.bf16.msra.mxu1 %v5784_v2  ;;  %v2942_v2 = vpack.c.bf16 %v2926_v22, %v2925_v50 }
 0x290   : > { %5197 = vmatprep.subr.bf16.mxu1 %v5785_v36 }
 0x291   : > { %5246 = vmatpush3.bf16.msra.mxu0 %v5793_v49 }
 0x292   : > { %5247 = vmatprep.subr.bf16.mxu0 %v5794_v43 }
 0x293   : > { %5198 = vmatpush3.bf16.msra.mxu1 %v5785_v36 }
 0x294   : > { %5199 = vmatprep.subr.bf16.mxu1 %v5786_v27 }
 0x295   : > { %5248 = vmatpush3.bf16.msra.mxu0 %v5794_v43 }
 0x296   : > { %5168 = vmatmul.mubr.bf16.gmra.mrb[12].mxu1 %v2934_v45  ;;  %5249 = vmatprep.subr.bf16.mxu0 %v5795_v59 }
 0x297   : > { %5171 = vmatprep.mubr.bf16.mxu1 %v2935_v56  ;;  %5200 = vmatpush3.bf16.msra.mxu1 %v5786_v27 }
 0x298   : > { %5201 = vmatprep.subr.bf16.mxu1 %v5787_v3 }
 0x299   : > { %5250 = vmatpush3.bf16.msra.mxu0 %v5795_v59 }
 0x29a   : > { %5283 = vmatprep.subr.bf16.mxu0 %v5796_v25 }
 0x29b   : > { %5202 = vmatpush3.bf16.msra.mxu1 %v5787_v3 }
 0x29e   : > { %5172 = vmatmul.mubr.bf16.gmra.mrb[16].mxu1 %v2936_v61 }
 0x29f   : > { %5175 = vmatprep.mubr.bf16.mxu1 %v2937_v23 }
 0x2a6   : > { %5176 = vmatmul.mubr.bf16.gmra.mrb[20].mxu1 %v2938_v19 }
 0x2a7   : > { %5179 = vmatprep.mubr.bf16.mxu1 %v2939_v57 }
 0x2ae   : > { %5180 = vmatmul.mubr.bf16.gmra.mrb[24].mxu1 %v2940_v62 }
 0x2af   : > { %5183 = vmatprep.mubr.bf16.mxu1 %v2941_v31 }
 0x2b6   : > { %5184 = vmatmul.mubr.bf16.gmra.mrb[28].mxu1 %v2942_v2 }
 0x2b7   : > { %5203 = vmatprep.mubr.bf16.mxu1 %v6495_v37 }
 0x2be   : > { %5204 = vmatmul.mubr.bf16.vlgmr.msra.gmra.mrb[0].mxu1 %v6497_v32 }
 0x2bf   : > { %5207 = vmatprep.mubr.bf16.mxu1 %v6509_v29 }
 0x2c6   : > { %5208 = vmatmul.mubr.bf16.gmra.mrb[4].mxu1 %v6511_v34 }
 0x2c7   : > { %5211 = vmatprep.mubr.bf16.mxu1 %v6522_v41 }
 0x2ce   : > { %5212 = vmatmul.mubr.bf16.gmra.mrb[8].mxu1 %v6524_v58 }
 0x2cf   : > { %5215 = vmatprep.mubr.bf16.mxu1 %v6535_v5 }
 0x2d6   : > { %5216 = vmatmul.mubr.bf16.gmra.mrb[12].mxu1 %v6537_v47  ;;  %v3231_v47 = vld [vmem:[#allocation2 + $0x19a] sm:$0xff] }
 0x2d7   : > { %5219 = vmatprep.mubr.bf16.mxu1 %v6549_v20  ;;  %v3232_v20 = vld [vmem:[#allocation2 + $0x1a2] sm:$0xff] }
 0x2de   : > { %5220 = vmatmul.mubr.bf16.gmra.mrb[16].mxu1 %v6551_v28  ;;  %v4917_v37 = vpop.f32.mrb[32].mxu0  ;;  %v3248_v28 = vpack.c.bf16 %v3232_v20, %v3231_v47 }
 0x2df   : > { %5223 = vmatprep.mubr.bf16.mxu1 %v6557_v33  ;;  %v1511_v32 = vpop.f32.mrb[33].mxu0 }
 0x2e0   : > { %v4918_v53 = vpop.f32.mrb[34].mxu0 }
 0x2e1   : > { %v1514_v29 = vpop.f32.mrb[35].mxu0 }
 0x2e6   : > { %5224 = vmatmul.mubr.bf16.gmra.mrb[20].mxu1 %v6559_v35  ;;  %v4921_v34 = vpop.f32.mrb[36].mxu0 }
 0x2e7   : > { %5227 = vmatprep.mubr.bf16.mxu1 %v6565_v42  ;;  %v1527_v41 = vpop.f32.mrb[37].mxu0 }
 0x2e8   : > { %v4922_v58 = vpop.f32.mrb[38].mxu0 }
 0x2e9   : > { %v6661_v5 = vpop.f32.mrb[39].mxu0 }
 0x2ee   : > { %5228 = vmatmul.mubr.bf16.gmra.mrb[24].mxu1 %v6567_v24  ;;  %v6664_v33 = vpop.f32.mrb[40].mxu0 }
 0x2ef   : > { %5231 = vmatprep.mubr.bf16.mxu1 %v6573_v6  ;;  %v6666_v36 = vpop.f32.mrb[41].mxu0 }
 0x2f0   : > { %v6668_v35 = vpop.f32.mrb[42].mxu0 }
 0x2f1   : > { %v6670_v42 = vpop.f32.mrb[43].mxu0 }
 0x2f6   : > { %5232 = vmatmul.mubr.bf16.gmra.mrb[28].mxu1 %v3248_v28  ;;  %v6672_v55 = vpop.f32.mrb[44].mxu0 }
 0x2f7   : > { %v6674_v0 = vpop.f32.mrb[45].mxu0 }
 0x2f8   : > { %v6676_v24 = vpop.f32.mrb[46].mxu0 }
 0x2f9   : > { %v6678_v44 = vpop.f32.mrb[47].mxu0 }
 0x2fe   : > { %v6680_v6 = vpop.f32.mrb[48].mxu0 }
 0x2ff   : > { %v6682_v7 = vpop.f32.mrb[49].mxu0 }
 0x300   : > { %v6684_v27 = vpop.f32.mrb[50].mxu0 }
 0x301   : > { %v6686_v45 = vpop.f32.mrb[51].mxu0 }
 0x306   : > { %v6688_v56 = vpop.f32.mrb[52].mxu0 }
 0x307   : > { %v6690_v3 = vpop.f32.mrb[53].mxu0 }
 0x308   : > { %v6692_v52 = vpop.f32.mrb[54].mxu0 }
 0x309   : > { %v6694_v1 = vpop.f32.mrb[55].mxu0 }
 0x30e   : > { %v6696_v40 = vpop.f32.mrb[56].mxu0 }
 0x30f   : > { %v6698_v39 = vpop.f32.mrb[57].mxu0 }
 0x310   : > { %v6700_v61 = vpop.f32.mrb[58].mxu0 }
 0x311   : > { %v6702_v23 = vpop.f32.mrb[59].mxu0 }
 0x316   : > { %v6707_v51 = vpop.f32.mrb[60].mxu0 }
 0x317   : > { %v6709_v54 = vpop.f32.mrb[61].mxu0 }
 0x318   : > { %v6711_v38 = vpop.f32.mrb[62].mxu0 }
 0x319   : > { %v6713_v30 = vpop.f32.mrb[63].mxu0 }
 0x391   : > { %v5205_v19 = vpop.f32.mrb[0].mxu1 }
 0x392   : > { %v5331_v57 = vadd.f32 %v5205_v19, %v4917_v37  ;;  %v3348_v48 = vpop.f32.mrb[1].mxu1 }
 0x393   : > { %v5332_v26 = vadd.f32 %v3348_v48, %v1511_v32  ;;  %v5206_v21 = vpop.f32.mrb[2].mxu1 }
 0x394   : > { %v3516_v60 = vadd.f32 %v5331_v57, %v6721_v63  ;;  %v5333_v8 = vadd.f32 %v5206_v21, %v4918_v53  ;;  %v3351_v62 = vpop.f32.mrb[3].mxu1 }
 0x395   : > { %v3514_v46 = vadd.f32 %v5332_v26, %v6721_v63  ;;  %v5334_v31 = vadd.f32 %v3351_v62, %v1514_v29  ;;  %v5797_v29 = vld [vmem:[%s6897_s7 + $0x8] sm:$0xff]  }
 0x396   : > { %v3517_v49 = vadd.f32 %v5333_v8, %v6721_v63  ;;  %v3548_v22 = vmax.f32 %v3516_v60, 0.0 }
 0x397   : > { %v3515_v50 = vadd.f32 %v5334_v31, %v6721_v63  ;;  %v3546_v43 = vmax.f32 %v3514_v46, 0.0 }
 0x398   : > { %v3549_v2 = vmax.f32 %v3517_v49, 0.0 }
 0x399   : > { %v3547_v47 = vmax.f32 %v3515_v50, 0.0  ;;  %v5209_v20 = vpop.f32.mrb[4].mxu1 }
 0x39a   : > { %v3579_v37 = vpack.c.bf16 %v3549_v2, %v3548_v22  ;;  %v5335_v28 = vadd.f32 %v5209_v20, %v4921_v34  ;;  %v3364_v32 = vpop.f32.mrb[5].mxu1 }
 0x39b   : > { %v5336_v59 = vadd.f32 %v3364_v32, %v1527_v41  ;;  %v5210_v19 = vpop.f32.mrb[6].mxu1  ;;  %v3578_v57 = vpack.c.bf16 %v3547_v47, %v3546_v43 }
 0x39c   : > { %v3520_v53 = vadd.f32 %v5335_v28, %v6721_v63  ;;  %v5337_v48 = vadd.f32 %v5210_v19, %v4922_v58  ;;  %v3367_v26 = vpop.f32.mrb[7].mxu1  ;;  %v5798_v58 = vld [vmem:[%s6897_s7 + $0x10] sm:$0xff]   ;;  %v5799_v28 = vld [vmem:[%s6897_s7 + $0x18] sm:$0xff]  }
 0x39d   : > { %v3518_v21 = vadd.f32 %v5336_v59, %v6721_v63  ;;  %v5338_v60 = vadd.f32 %v3367_v26, %v6661_v5  ;;  %5251 = vmatprep.mubr.bf16.mxu0 %v3578_v57 }
 0x39e   : > { %v3521_v8 = vadd.f32 %v5337_v48, %v6721_v63  ;;  %5252 = vmatmul.mubr.bf16.vlgmr.msra.gmra.mrb[64].mxu0 %v3579_v37  ;;  %v3552_v41 = vmax.f32 %v3520_v53, 0.0 }
 0x39f   : > { %v3519_v34 = vadd.f32 %v5338_v60, %v6721_v63  ;;  %5284 = vmatpush3.bf16.msra.mxu0 %v5796_v25  ;;  %v3550_v46 = vmax.f32 %v3518_v21, 0.0 }
 0x3a0   : > { %v3553_v62 = vmax.f32 %v3521_v8, 0.0  ;;  %5285 = vmatprep.subr.bf16.mxu0 %v5797_v29 }
 0x3a1   : > { %v3551_v31 = vmax.f32 %v3519_v34, 0.0  ;;  %v5213_v49 = vpop.f32.mrb[8].mxu1 }
 0x3a2   : > { %v5339_v50 = vadd.f32 %v5213_v49, %v6664_v33  ;;  %v3380_v5 = vpop.f32.mrb[9].mxu1  ;;  %v3581_v22 = vpack.c.bf16 %v3553_v62, %v3552_v41 }
 0x3a3   : > { %v5340_v2 = vadd.f32 %v3380_v5, %v6666_v36  ;;  %v5214_v43 = vpop.f32.mrb[10].mxu1  ;;  %v3580_v47 = vpack.c.bf16 %v3551_v31, %v3550_v46  ;;  %5286 = vmatpush3.bf16.msra.mxu0 %v5797_v29  ;;  %v5801_v46 = vld [vmem:[%s6897_s7 + $0x28] sm:$0xff]  }
 0x3a4   : > { %v3524_v25 = vadd.f32 %v5339_v50, %v6721_v63  ;;  %v5341_v20 = vadd.f32 %v5214_v43, %v6668_v35  ;;  %v3383_v37 = vpop.f32.mrb[11].mxu1  ;;  %5287 = vmatprep.subr.bf16.mxu0 %v5798_v58  ;;  %v5800_v35 = vld [vmem:[%s6897_s7 + $0x20] sm:$0xff]  }
 0x3a5   : > { %v3522_v32 = vadd.f32 %v5340_v2, %v6721_v63  ;;  %v5342_v33 = vadd.f32 %v3383_v37, %v6670_v42  ;;  %5255 = vmatprep.mubr.bf16.mxu0 %v3580_v47 }
 0x3a6   : > { %v3525_v36 = vadd.f32 %v5341_v20, %v6721_v63  ;;  %5256 = vmatmul.mubr.bf16.gmra.mrb[68].mxu0 %v3581_v22  ;;  %v3556_v19 = vmax.f32 %v3524_v25, 0.0 }
 0x3a7   : > { %v3523_v59 = vadd.f32 %v5342_v33, %v6721_v63  ;;  %5288 = vmatpush3.bf16.msra.mxu0 %v5798_v58  ;;  %v3554_v53 = vmax.f32 %v3522_v32, 0.0 }
 0x3a8   : > { %v3557_v57 = vmax.f32 %v3525_v36, 0.0  ;;  %5289 = vmatprep.subr.bf16.mxu0 %v5799_v28 }
 0x3a9   : > { %v3555_v48 = vmax.f32 %v3523_v59, 0.0  ;;  %v5217_v26 = vpop.f32.mrb[12].mxu1  ;;  %v5803_v59 = vld [vmem:[%s6897_s7 + $0x38] sm:$0xff]  }
 0x3aa   : > { %v5343_v29 = vadd.f32 %v5217_v26, %v6672_v55  ;;  %v3396_v42 = vpop.f32.mrb[13].mxu1  ;;  %v3583_v21 = vpack.c.bf16 %v3557_v57, %v3556_v19 }
 0x3ab   : > { %v5344_v60 = vadd.f32 %v3396_v42, %v6674_v0  ;;  %v5218_v8 = vpop.f32.mrb[14].mxu1  ;;  %v3582_v34 = vpack.c.bf16 %v3555_v48, %v3554_v53  ;;  %5290 = vmatpush3.bf16.msra.mxu0 %v5799_v28 }
 0x3ac   : > { %v3528_v41 = vadd.f32 %v5343_v29, %v6721_v63  ;;  %v5345_v62 = vadd.f32 %v5218_v8, %v6676_v24  ;;  %v3399_v58 = vpop.f32.mrb[15].mxu1  ;;  %5291 = vmatprep.subr.bf16.mxu0 %v5800_v35  ;;  %v5802_v24 = vld [vmem:[%s6897_s7 + $0x30] sm:$0xff]  }
 0x3ad   : > { %v3526_v31 = vadd.f32 %v5344_v60, %v6721_v63  ;;  %v5346_v55 = vadd.f32 %v3399_v58, %v6678_v44  ;;  %5259 = vmatprep.mubr.bf16.mxu0 %v3582_v34 }
 0x3ae   : > { %v3529_v0 = vadd.f32 %v5345_v62, %v6721_v63  ;;  %5260 = vmatmul.mubr.bf16.gmra.mrb[72].mxu0 %v3583_v21  ;;  %v3560_v50 = vmax.f32 %v3528_v41, 0.0 }
 0x3af   : > { %v3527_v49 = vadd.f32 %v5346_v55, %v6721_v63  ;;  %5292 = vmatpush3.bf16.msra.mxu0 %v5800_v35  ;;  %v3558_v22 = vmax.f32 %v3526_v31, 0.0 }
 0x3b0   : > { %v3561_v5 = vmax.f32 %v3529_v0, 0.0  ;;  %5293 = vmatprep.subr.bf16.mxu0 %v5801_v46 }
 0x3b1   : > { %v3559_v2 = vmax.f32 %v3527_v49, 0.0  ;;  %v5221_v43 = vpop.f32.mrb[16].mxu1 }
 0x3b2   : > { %v5347_v47 = vadd.f32 %v5221_v43, %v6680_v6  ;;  %v3412_v44 = vpop.f32.mrb[17].mxu1  ;;  %v3585_v25 = vpack.c.bf16 %v3561_v5, %v3560_v50 }
 0x3b3   : > { %v5348_v20 = vadd.f32 %v3412_v44, %v6682_v7  ;;  %v5222_v37 = vpop.f32.mrb[18].mxu1  ;;  %v3584_v28 = vpack.c.bf16 %v3559_v2, %v3558_v22  ;;  %5294 = vmatpush3.bf16.msra.mxu0 %v5801_v46 }
 0x3b4   : > { %v3532_v32 = vadd.f32 %v5347_v47, %v6721_v63  ;;  %v5349_v33 = vadd.f32 %v5222_v37, %v6684_v27  ;;  %v3415_v36 = vpop.f32.mrb[19].mxu1  ;;  %5295 = vmatprep.subr.bf16.mxu0 %v5802_v24 }
 0x3b5   : > { %v3530_v19 = vadd.f32 %v5348_v20, %v6721_v63  ;;  %v5350_v6 = vadd.f32 %v3415_v36, %v6686_v45  ;;  %5263 = vmatprep.mubr.bf16.mxu0 %v3584_v28 }
 0x3b6   : > { %v3533_v7 = vadd.f32 %v5349_v33, %v6721_v63  ;;  %5264 = vmatmul.mubr.bf16.gmra.mrb[76].mxu0 %v3585_v25  ;;  %v3564_v35 = vmax.f32 %v3532_v32, 0.0 }
 0x3b7   : > { %v3531_v57 = vadd.f32 %v5350_v6, %v6721_v63  ;;  %5296 = vmatpush3.bf16.msra.mxu0 %v5802_v24  ;;  %v3562_v27 = vmax.f32 %v3530_v19, 0.0 }
 0x3b8   : > { %v3565_v53 = vmax.f32 %v3533_v7, 0.0  ;;  %5297 = vmatprep.subr.bf16.mxu0 %v5803_v59 }
 0x3b9   : > { %v3563_v48 = vmax.f32 %v3531_v57, 0.0  ;;  %v5225_v26 = vpop.f32.mrb[20].mxu1 }
 0x3ba   : > { %v5351_v29 = vadd.f32 %v5225_v26, %v6688_v56  ;;  %v3428_v42 = vpop.f32.mrb[21].mxu1  ;;  %v3587_v21 = vpack.c.bf16 %v3565_v53, %v3564_v35 }
 0x3bb   : > { %v5352_v60 = vadd.f32 %v3428_v42, %v6690_v3  ;;  %v5226_v45 = vpop.f32.mrb[22].mxu1  ;;  %v3586_v8 = vpack.c.bf16 %v3563_v48, %v3562_v27  ;;  %5298 = vmatpush3.bf16.msra.mxu0 %v5803_v59 }
 0x3bc   : > { %v3536_v34 = vadd.f32 %v5351_v29, %v6721_v63  ;;  %v5353_v41 = vadd.f32 %v5226_v45, %v6692_v52  ;;  %v3431_v62 = vpop.f32.mrb[23].mxu1 }
 0x3bd   : > { %v3534_v58 = vadd.f32 %v5352_v60, %v6721_v63  ;;  %v5354_v46 = vadd.f32 %v3431_v62, %v6694_v1  ;;  %5267 = vmatprep.mubr.bf16.mxu0 %v3586_v8 }
 0x3be   : > { %v3537_v31 = vadd.f32 %v5353_v41, %v6721_v63  ;;  %5268 = vmatmul.mubr.bf16.gmra.mrb[80].mxu0 %v3587_v21  ;;  %v3568_v55 = vmax.f32 %v3536_v34, 0.0 }
 0x3bf   : > { %v3535_v56 = vadd.f32 %v5354_v46, %v6721_v63  ;;  %v3566_v0 = vmax.f32 %v3534_v58, 0.0 }
 0x3c0   : > { %v3569_v3 = vmax.f32 %v3537_v31, 0.0 }
 0x3c1   : > { %v3567_v49 = vmax.f32 %v3535_v56, 0.0  ;;  %v5229_v50 = vpop.f32.mrb[24].mxu1 }
 0x3c2   : > { %v5355_v5 = vadd.f32 %v5229_v50, %v6696_v40  ;;  %v3444_v24 = vpop.f32.mrb[25].mxu1  ;;  %v3589_v52 = vpack.c.bf16 %v3569_v3, %v3568_v55 }
 0x3c3   : > { %v5356_v22 = vadd.f32 %v3444_v24, %v6698_v39  ;;  %v5230_v2 = vpop.f32.mrb[26].mxu1  ;;  %v3588_v43 = vpack.c.bf16 %v3567_v49, %v3566_v0 }
 0x3c4   : > { %v3540_v1 = vadd.f32 %v5355_v5, %v6721_v63  ;;  %v5357_v47 = vadd.f32 %v5230_v2, %v6700_v61  ;;  %v3447_v44 = vpop.f32.mrb[27].mxu1 }
 0x3c5   : > { %v3538_v25 = vadd.f32 %v5356_v22, %v6721_v63  ;;  %v5358_v20 = vadd.f32 %v3447_v44, %v6702_v23  ;;  %5271 = vmatprep.mubr.bf16.mxu0 %v3588_v43 }
 0x3c6   : > { %v3541_v37 = vadd.f32 %v5357_v47, %v6721_v63  ;;  %5272 = vmatmul.mubr.bf16.gmra.mrb[84].mxu0 %v3589_v52  ;;  %v3572_v28 = vmax.f32 %v3540_v1, 0.0 }
 0x3c7   : > { %v3539_v40 = vadd.f32 %v5358_v20, %v6721_v63  ;;  %v3570_v39 = vmax.f32 %v3538_v25, 0.0 }
 0x3c8   : > { %v3573_v32 = vmax.f32 %v3541_v37, 0.0 }
 0x3c9   : > { %v3571_v33 = vmax.f32 %v3539_v40, 0.0  ;;  %v5233_v36 = vpop.f32.mrb[28].mxu1 }
 0x3ca   : > { %v5359_v59 = vadd.f32 %v5233_v36, %v6707_v51  ;;  %v3460_v19 = vpop.f32.mrb[29].mxu1  ;;  %v3591_v61 = vpack.c.bf16 %v3573_v32, %v3572_v28 }
 0x3cb   : > { %v5360_v6 = vadd.f32 %v3460_v19, %v6709_v54  ;;  %v5234_v7 = vpop.f32.mrb[30].mxu1  ;;  %v3590_v57 = vpack.c.bf16 %v3571_v33, %v3570_v39 }
 0x3cc   : > { %v3544_v23 = vadd.f32 %v5359_v59, %v6721_v63  ;;  %v5361_v35 = vadd.f32 %v5234_v7, %v6711_v38  ;;  %v3463_v53 = vpop.f32.mrb[31].mxu1 }
 0x3cd   : > { %v3542_v27 = vadd.f32 %v5360_v6, %v6721_v63  ;;  %v5362_v48 = vadd.f32 %v3463_v53, %v6713_v30  ;;  %5275 = vmatprep.mubr.bf16.mxu0 %v3590_v57 }
 0x3ce   : > { %v3545_v26 = vadd.f32 %v5361_v35, %v6721_v63  ;;  %5276 = vmatmul.mubr.bf16.gmra.mrb[88].mxu0 %v3591_v61  ;;  %v3576_v29 = vmax.f32 %v3544_v23, 0.0 }
 0x3cf   : > { %v3543_v51 = vadd.f32 %v5362_v48, %v6721_v63  ;;  %v3574_v54 = vmax.f32 %v3542_v27, 0.0 }
 0x3d0   : > { %v3577_v42 = vmax.f32 %v3545_v26, 0.0 }
 0x3d1   : > { %v3575_v21 = vmax.f32 %v3543_v51, 0.0 }
 0x3d2   : > { %v3593_v60 = vpack.c.bf16 %v3577_v42, %v3576_v29 }
 0x3d3   : > { %v3592_v45 = vpack.c.bf16 %v3575_v21, %v3574_v54 }
 0x3d5   : > { %5279 = vmatprep.mubr.bf16.mxu0 %v3592_v45 }
 0x3d6   : > { %5280 = vmatmul.mubr.bf16.gmra.mrb[92].mxu0 %v3593_v60 }
 0x3d7   : > { %5299 = vmatprep.mubr.bf16.mxu0 %v5898_v4  ;;  %v6974_v4 = vld [vmem:[#allocation3_spill] sm:$0xff] }
 0x3de   : > { %5300 = vmatmul.mubr.bf16.vlgmr.msra.gmra.mrb[64].mxu0 %v5914_v9  ;;  %v6975_v9 = vld [vmem:[#allocation4_spill] sm:$0xff] }
 0x3df   : > { %5303 = vmatprep.mubr.bf16.mxu0 %v5917_v10  ;;  %v6976_v10 = vld [vmem:[#allocation5_spill] sm:$0xff] }
 0x3e6   : > { %5304 = vmatmul.mubr.bf16.gmra.mrb[68].mxu0 %v5922_v11  ;;  %v6977_v11 = vld [vmem:[#allocation6_spill] sm:$0xff] }
 0x3e7   : > { %5307 = vmatprep.mubr.bf16.mxu0 %v5925_v12  ;;  %v6978_v12 = vld [vmem:[#allocation7_spill] sm:$0xff] }
 0x3ee   : > { %5308 = vmatmul.mubr.bf16.gmra.mrb[72].mxu0 %v5930_v13  ;;  %v4445_v13 = vld [vmem:[%s6896_s6] ss:$0 sm:$0xff] }
 0x3ef   : > { %5311 = vmatprep.mubr.bf16.mxu0 %v5933_v14  ;;  %v4454_v14 = vld [vmem:[%s6898_s8] ss:$0 sm:$0xff] }
 0x3f6   : > { %5312 = vmatmul.mubr.bf16.gmra.mrb[76].mxu0 %v5938_v15  ;;  %v6823_v15 = vadd.f32 %v4454_v14, %v4445_v13 }
 0x3f7   : > { %5315 = vmatprep.mubr.bf16.mxu0 %v5941_v16 }
 0x3fe   : > { %5316 = vmatmul.mubr.bf16.gmra.mrb[80].mxu0 %v5946_v17 }
 0x3ff   : > { %5319 = vmatprep.mubr.bf16.mxu0 %v5949_v18 }
 0x406   : > { %5320 = vmatmul.mubr.bf16.gmra.mrb[84].mxu0 %v6974_v4 }
 0x407   : > { %5323 = vmatprep.mubr.bf16.mxu0 %v6975_v9 }
 0x40e   : > { %5324 = vmatmul.mubr.bf16.gmra.mrb[88].mxu0 %v6976_v10 }
 0x40f   : > { %5327 = vmatprep.mubr.bf16.mxu0 %v6977_v11 }
 0x416   : > { %5328 = vmatmul.mubr.bf16.gmra.mrb[92].mxu0 %v6978_v12 }
 0x4b1   : > { %v5301_v16 = vpop.f32.mrb[64].mxu0 }
 0x4b2   : > { %v5363_v17 = vadd.f32 %v5301_v16, %v4445_v13  ;;  %v3931_v18 = vpop.f32.mrb[65].mxu0 }
 0x4b3   : > { %v5365_v38 = vadd.f32 %v4445_v13, %v3931_v18  ;;  %v5302_v30 = vpop.f32.mrb[66].mxu0 }
 0x4b4   : > { %v5364_v63 = vadd.f32 %v5363_v17, %v4454_v14  ;;  %v5368_v8 = vadd.f32 %v6823_v15, %v5302_v30  ;;  %v3934_v34 = vpop.f32.mrb[67].mxu0 }
 0x4b5   : > { %v5366_v41 = vadd.f32 %v5365_v38, %v4454_v14  ;;  %v5370_v62 = vadd.f32 %v6823_v15, %v3934_v34 }
 0x4b6   : > { %v4092_v58 = vmax.f32 %v5364_v63, 0.0  ;;  %v4093_v46 = vmax.f32 %v5368_v8, 0.0 }
 0x4b7   : > { %v4090_v31 = vmax.f32 %v5366_v41, 0.0  ;;  %v4091_v56 = vmax.f32 %v5370_v62, 0.0 }
 0x4b8   : > { %4124 = vst [vmem:[%s5892_s25 + $0x10] sm:$0xff] %v4092_v58  ;;  %4125 = vst [vmem:[%s5892_s25 + $0x18] sm:$0xff] %v4093_v46 }
 0x4b9   : > { %4122 = vst [vmem:[%s5892_s25] sm:$0xff] %v4090_v31  ;;  %4123 = vst [vmem:[%s5892_s25 + $0x8] sm:$0xff] %v4091_v56  ;;  %v5305_v55 = vpop.f32.mrb[68].mxu0 }
 0x4ba   : > { %v5372_v3 = vadd.f32 %v6823_v15, %v5305_v55  ;;  %v3947_v0 = vpop.f32.mrb[69].mxu0 }
 0x4bb   : > { %v5374_v49 = vadd.f32 %v6823_v15, %v3947_v0  ;;  %v5306_v50 = vpop.f32.mrb[70].mxu0 }
 0x4bc   : > { %v4096_v5 = vmax.f32 %v5372_v3, 0.0  ;;  %v5376_v24 = vadd.f32 %v6823_v15, %v5306_v50  ;;  %v3950_v52 = vpop.f32.mrb[71].mxu0 }
 0x4bd   : > { %v4094_v22 = vmax.f32 %v5374_v49, 0.0  ;;  %v5378_v2 = vadd.f32 %v6823_v15, %v3950_v52 }
 0x4be   : > { %4128 = vst [vmem:[%s5892_s25 + $0x30] sm:$0xff] %v4096_v5  ;;  %v4097_v43 = vmax.f32 %v5376_v24, 0.0 }
 0x4bf   : > { %4126 = vst [vmem:[%s5892_s25 + $0x20] sm:$0xff] %v4094_v22  ;;  %v4095_v1 = vmax.f32 %v5378_v2, 0.0 }
 0x4c0   : > { %4129 = vst [vmem:[%s5892_s25 + $0x38] sm:$0xff] %v4097_v43 }
 0x4c1   : > { %4127 = vst [vmem:[%s5892_s25 + $0x28] sm:$0xff] %v4095_v1  ;;  %v5309_v47 = vpop.f32.mrb[72].mxu0 }
 0x4c2   : > { %v5380_v44 = vadd.f32 %v6823_v15, %v5309_v47  ;;  %v3963_v25 = vpop.f32.mrb[73].mxu0 }
 0x4c3   : > { %v5382_v20 = vadd.f32 %v6823_v15, %v3963_v25  ;;  %v5310_v37 = vpop.f32.mrb[74].mxu0 }
 0x4c4   : > { %v4100_v40 = vmax.f32 %v5380_v44, 0.0  ;;  %v5384_v28 = vadd.f32 %v6823_v15, %v5310_v37  ;;  %v3966_v32 = vpop.f32.mrb[75].mxu0 }
 0x4c5   : > { %v4098_v39 = vmax.f32 %v5382_v20, 0.0  ;;  %v5386_v33 = vadd.f32 %v6823_v15, %v3966_v32 }
 0x4c6   : > { %4132 = vst [vmem:[%s5892_s25 + $0x50] sm:$0xff] %v4100_v40  ;;  %v4101_v36 = vmax.f32 %v5384_v28, 0.0 }
 0x4c7   : > { %4130 = vst [vmem:[%s5892_s25 + $0x40] sm:$0xff] %v4098_v39  ;;  %v4099_v59 = vmax.f32 %v5386_v33, 0.0 }
 0x4c8   : > { %4133 = vst [vmem:[%s5892_s25 + $0x58] sm:$0xff] %v4101_v36 }
 0x4c9   : > { %4131 = vst [vmem:[%s5892_s25 + $0x48] sm:$0xff] %v4099_v59  ;;  %v5313_v19 = vpop.f32.mrb[76].mxu0 }
 0x4ca   : > { %v5388_v61 = vadd.f32 %v6823_v15, %v5313_v19  ;;  %v3979_v6 = vpop.f32.mrb[77].mxu0 }
 0x4cb   : > { %v5390_v7 = vadd.f32 %v6823_v15, %v3979_v6  ;;  %v5314_v57 = vpop.f32.mrb[78].mxu0 }
 0x4cc   : > { %v4104_v23 = vmax.f32 %v5388_v61, 0.0  ;;  %v5392_v35 = vadd.f32 %v6823_v15, %v5314_v57  ;;  %v3982_v53 = vpop.f32.mrb[79].mxu0 }
 0x4cd   : > { %v4102_v27 = vmax.f32 %v5390_v7, 0.0  ;;  %v5394_v48 = vadd.f32 %v6823_v15, %v3982_v53 }
 0x4ce   : > { %4136 = vst [vmem:[%s5892_s25 + $0x70] sm:$0xff] %v4104_v23  ;;  %v4105_v26 = vmax.f32 %v5392_v35, 0.0 }
 0x4cf   : > { %4134 = vst [vmem:[%s5892_s25 + $0x60] sm:$0xff] %v4102_v27  ;;  %v4103_v51 = vmax.f32 %v5394_v48, 0.0 }
 0x4d0   : > { %4137 = vst [vmem:[%s5892_s25 + $0x78] sm:$0xff] %v4105_v26 }
 0x4d1   : > { %4135 = vst [vmem:[%s5892_s25 + $0x68] sm:$0xff] %v4103_v51  ;;  %v5317_v29 = vpop.f32.mrb[80].mxu0 }
 0x4d2   : > { %v5396_v42 = vadd.f32 %v6823_v15, %v5317_v29  ;;  %v3995_v54 = vpop.f32.mrb[81].mxu0 }
 0x4d3   : > { %v5398_v21 = vadd.f32 %v6823_v15, %v3995_v54  ;;  %v5318_v60 = vpop.f32.mrb[82].mxu0 }
 0x4d4   : > { %v4108_v45 = vmax.f32 %v5396_v42, 0.0  ;;  %v5400_v4 = vadd.f32 %v6823_v15, %v5318_v60  ;;  %v3998_v9 = vpop.f32.mrb[83].mxu0 }
 0x4d5   : > { %v4106_v10 = vmax.f32 %v5398_v21, 0.0  ;;  %v5402_v11 = vadd.f32 %v6823_v15, %v3998_v9 }
 0x4d6   : > { %4140 = vst [vmem:[%s5892_s25 + $0x90] sm:$0xff] %v4108_v45  ;;  %v4109_v12 = vmax.f32 %v5400_v4, 0.0 }
 0x4d7   : > { %4138 = vst [vmem:[%s5892_s25 + $0x80] sm:$0xff] %v4106_v10  ;;  %v4107_v13 = vmax.f32 %v5402_v11, 0.0 }
 0x4d8   : > { %4141 = vst [vmem:[%s5892_s25 + $0x98] sm:$0xff] %v4109_v12 }
 0x4d9   : > { %4139 = vst [vmem:[%s5892_s25 + $0x88] sm:$0xff] %v4107_v13  ;;  %v5321_v14 = vpop.f32.mrb[84].mxu0 }
 0x4da   : > { %v5404_v16 = vadd.f32 %v6823_v15, %v5321_v14  ;;  %v4011_v17 = vpop.f32.mrb[85].mxu0 }
 0x4db   : > { %v5406_v18 = vadd.f32 %v6823_v15, %v4011_v17  ;;  %v5322_v38 = vpop.f32.mrb[86].mxu0 }
 0x4dc   : > { %v4112_v30 = vmax.f32 %v5404_v16, 0.0  ;;  %v5408_v63 = vadd.f32 %v6823_v15, %v5322_v38  ;;  %v4014_v8 = vpop.f32.mrb[87].mxu0 }
 0x4dd   : > { %v4110_v34 = vmax.f32 %v5406_v18, 0.0  ;;  %v5410_v41 = vadd.f32 %v6823_v15, %v4014_v8 }
 0x4de   : > { %4144 = vst [vmem:[%s5892_s25 + $0xb0] sm:$0xff] %v4112_v30  ;;  %v4113_v62 = vmax.f32 %v5408_v63, 0.0 }
 0x4df   : > { %4142 = vst [vmem:[%s5892_s25 + $0xa0] sm:$0xff] %v4110_v34  ;;  %v4111_v58 = vmax.f32 %v5410_v41, 0.0 }
 0x4e0   : > { %4145 = vst [vmem:[%s5892_s25 + $0xb8] sm:$0xff] %v4113_v62 }
 0x4e1   : > { %4143 = vst [vmem:[%s5892_s25 + $0xa8] sm:$0xff] %v4111_v58  ;;  %v5325_v46 = vpop.f32.mrb[88].mxu0 }
 0x4e2   : > { %v5412_v31 = vadd.f32 %v6823_v15, %v5325_v46  ;;  %v4027_v56 = vpop.f32.mrb[89].mxu0 }
 0x4e3   : > { %v5414_v55 = vadd.f32 %v6823_v15, %v4027_v56  ;;  %v5326_v3 = vpop.f32.mrb[90].mxu0 }
 0x4e4   : > { %v4116_v0 = vmax.f32 %v5412_v31, 0.0  ;;  %v5416_v49 = vadd.f32 %v6823_v15, %v5326_v3  ;;  %v4030_v50 = vpop.f32.mrb[91].mxu0 }
 0x4e5   : > { %v4114_v5 = vmax.f32 %v5414_v55, 0.0  ;;  %v5418_v24 = vadd.f32 %v6823_v15, %v4030_v50 }
 0x4e6   : > { %4148 = vst [vmem:[%s5892_s25 + $0xd0] sm:$0xff] %v4116_v0  ;;  %v4117_v52 = vmax.f32 %v5416_v49, 0.0 }
 0x4e7   : > { %4146 = vst [vmem:[%s5892_s25 + $0xc0] sm:$0xff] %v4114_v5  ;;  %v4115_v22 = vmax.f32 %v5418_v24, 0.0 }
 0x4e8   : > { %4149 = vst [vmem:[%s5892_s25 + $0xd8] sm:$0xff] %v4117_v52 }
 0x4e9   : > { %4147 = vst [vmem:[%s5892_s25 + $0xc8] sm:$0xff] %v4115_v22  ;;  %v5329_v2 = vpop.f32.mrb[92].mxu0 }
 0x4ea   : > { %v5420_v43 = vadd.f32 %v6823_v15, %v5329_v2  ;;  %v4043_v1 = vpop.f32.mrb[93].mxu0 }
 0x4eb   : > { %v5422_v47 = vadd.f32 %v6823_v15, %v4043_v1  ;;  %v5330_v44 = vpop.f32.mrb[94].mxu0 }
 0x4ec   : > { %v4120_v25 = vmax.f32 %v5420_v43, 0.0  ;;  %v5424_v20 = vadd.f32 %v6823_v15, %v5330_v44  ;;  %v4046_v37 = vpop.f32.mrb[95].mxu0 }
 0x4ed   : > { %v4118_v40 = vmax.f32 %v5422_v47, 0.0  ;;  %v5426_v28 = vadd.f32 %v6823_v15, %v4046_v37 }
 0x4ee   : > { %4152 = vst [vmem:[%s5892_s25 + $0xf0] sm:$0xff] %v4120_v25  ;;  %v4121_v32 = vmax.f32 %v5424_v20, 0.0 }
 0x4ef   : > { %4150 = vst [vmem:[%s5892_s25 + $0xe0] sm:$0xff] %v4118_v40  ;;  %v4119_v39 = vmax.f32 %v5426_v28, 0.0 }
 0x4f0   : > { %4153 = vst [vmem:[%s5892_s25 + $0xf8] sm:$0xff] %v4121_v32 }
 0x4f1   : > { %4151 = vst [vmem:[%s5892_s25 + $0xe8] sm:$0xff] %v4119_v39 }
 0x4f2 PF: > { %s19_s30 = sadd.s32 1, %s5810_s30  }
 0x4f3   : > { %p16_p5 = scmp.ge.s32.totalorder %s19_s30, 4  }
 0x4f5   :  { %18 = sbr.rel (!%p16_p5) target bundleno = 1 (0x1), region = 100 }

</bundles_post_ra>
